<compile_context>
chip_gen: v7x
topology: tpu7x:2x2x1
jax: 0.10.0
libtpu: 0.0.40
codegen_flags: <defaults>
</compile_context>

<pallas_src>
import math
import functools

import jax
import jax.numpy as jnp
from jax.experimental import pallas as pl
from jax.experimental.pallas import tpu as pltpu


ACT_DTYPE = jnp.bfloat16       # activation / weight storage dtype for matmuls
LN_EPS = 1e-12
_VMEM_BUDGET = 28 * 1024 * 1024   # target double-buffered working set
_VMEM_LIMIT = 48 * 1024 * 1024    # explicit scoped-VMEM limit (ok on v5e/v6e/v7x)


# ----------------------------- tile choosers --------------------------------


def _pick_tile(dim, cap, align):
    """Largest tile <= cap that divides `dim` and is `align`-aligned.
    Returns `dim` itself when dim <= cap (full block is always legal)."""
    if dim <= cap:
        return dim
    t = (cap // align) * align
    while t >= align:
        if dim % t == 0:
            return t
        t -= align
    return dim


def _pick_tile_pref(dim, cap, aligns=(256, 128)):
    """Like _pick_tile but prefers 256-aligned blocks (v6e/v7x MXU width)."""
    if dim <= cap:
        return dim
    for align in aligns:
        t = (cap // align) * align
        while t >= align:
            if dim % t == 0:
                return t
            t -= align
    return dim


def _pick_tm(M, fixed_bytes, per_row_bytes, cap=1024):
    """Row-tile: largest 16-aligned divisor of M whose double-buffered
    footprint (fixed weight tiles + per-row x/residual/out bytes) fits the
    VMEM budget."""
    room = _VMEM_BUDGET - fixed_bytes
    if per_row_bytes > 0 and room > 0:
        cap = min(cap, max(16, room // per_row_bytes))
    return _pick_tile(M, int(cap), 16)


def _pick_head_block(num_heads, head_dim):
    """Smallest head group whose lane width is a multiple of 128 (max grid
    parallelism).  Returns None if no such grouping exists (tiny models)."""
    for hb in range(1, num_heads + 1):
        if num_heads % hb == 0 and (hb * head_dim) % 128 == 0 and hb * head_dim <= 512:
            return hb
    return None


# ------------------------------ Pallas kernels -------------------------------


def _apply_act(y, activation):
    if activation == "tanh":
        return jnp.tanh(y)
    if activation == "gelu":
        # TODO(synk): HF BERT default is the exact erf-gelu; the tanh
        # approximation is used here for robust Mosaic lowering.
        return jax.nn.gelu(y, approximate=True)
    return y


def _matmul_bias_kernel(x_ref, w_ref, b_ref, o_ref, *, activation):
    """Single-K-step y = act(x @ w + b). bf16 inputs, f32 accumulation."""
    y = jnp.dot(x_ref[...], w_ref[...], preferred_element_type=jnp.float32)
    y = _apply_act(y + b_ref[...], activation)
    o_ref[...] = y.astype(o_ref.dtype)


def _matmul_acc_kernel(x_ref, w_ref, b_ref, o_ref, acc_ref, *, activation):
    """Multi-K fallback with an f32 VMEM accumulator."""
    @pl.when(pl.program_id(2) == 0)
    def _():
        acc_ref[...] = jnp.zeros_like(acc_ref)

    acc_ref[...] += jnp.dot(x_ref[...], w_ref[...],
                            preferred_element_type=jnp.float32)

    @pl.when(pl.program_id(2) == pl.num_programs(2) - 1)
    def _():
        y = _apply_act(acc_ref[...] + b_ref[...], activation)
        o_ref[...] = y.astype(o_ref.dtype)


def linear(x, w, b, activation=None, out_dtype=None):
    """y = activation(x @ w + b).  x:(M,K) w:(K,N) b:(N,)."""
    M, K = x.shape
    N = w.shape[1]
    out_dtype = out_dtype if out_dtype is not None else x.dtype

    tk = _pick_tile(K, 3072, 128)           # prefer full-K reduction
    tn = _pick_tile_pref(N, 1024)
    fixed = 2 * 2 * tk * tn                 # double-buffered bf16 weight tile
    per_row = 4 * tk + 4 * tn + 4 * tn      # 2x bf16 x row, 2x bf16 out row, f32 acc row
    tm = _pick_tm(M, fixed, per_row)

    bias = b.reshape(1, N).astype(jnp.float32)

    if tk == K:
        kernel = functools.partial(_matmul_bias_kernel, activation=activation)
        return pl.pallas_call(
            kernel,
            out_shape=jax.ShapeDtypeStruct((M, N), out_dtype),
            grid=(M // tm, N // tn),
            in_specs=[
                pl.BlockSpec((tm, K), lambda i, j: (i, 0)),
                pl.BlockSpec((K, tn), lambda i, j: (0, j)),
                pl.BlockSpec((1, tn), lambda i, j: (0, j)),
            ],
            out_specs=pl.BlockSpec((tm, tn), lambda i, j: (i, j)),
            compiler_params=pltpu.CompilerParams(
                dimension_semantics=("parallel", "parallel"),
                vmem_limit_bytes=_VMEM_LIMIT),
        )(x, w, bias)

    # multi-K fallback (not hit at BERT-base shapes)
    kernel = functools.partial(_matmul_acc_kernel, activation=activation)
    return pl.pallas_call(
        kernel,
        out_shape=jax.ShapeDtypeStruct((M, N), out_dtype),
        grid=(M // tm, N // tn, K // tk),
        in_specs=[
            pl.BlockSpec((tm, tk), lambda i, j, k: (i, k)),
            pl.BlockSpec((tk, tn), lambda i, j, k: (k, j)),
            pl.BlockSpec((1, tn), lambda i, j, k: (0, j)),
        ],
        out_specs=pl.BlockSpec((tm, tn), lambda i, j, k: (i, j)),
        scratch_shapes=[pltpu.VMEM((tm, tn), jnp.float32)],
        compiler_params=pltpu.CompilerParams(
            dimension_semantics=("parallel", "parallel", "arbitrary"),
            vmem_limit_bytes=_VMEM_LIMIT),
    )(x, w, bias)


def _matmul_add_ln_kernel(x_ref, w_ref, b_ref, r_ref, g_ref, bt_ref, o_ref, *, eps):
    """Fused y = LayerNorm((x @ w + b) + residual) * gamma + beta.
    Requires the full output row (tn == N) and a single K step."""
    y = jnp.dot(x_ref[...], w_ref[...], preferred_element_type=jnp.float32)
    y = y + b_ref[...] + r_ref[...].astype(jnp.float32)
    mu = jnp.mean(y, axis=-1, keepdims=True)
    var = jnp.mean(jnp.square(y - mu), axis=-1, keepdims=True)
    y = (y - mu) * jax.lax.rsqrt(var + eps)
    o_ref[...] = (y * g_ref[...] + bt_ref[...]).astype(o_ref.dtype)


def linear_add_ln(x, w, b, residual, gamma, beta, eps=LN_EPS):
    """LayerNorm(x @ w + b + residual).  x:(M,K) w:(K,N) residual:(M,N)."""
    M, K = x.shape
    N = w.shape[1]

    if K > 4096:   # would not fit a single-K VMEM step; fall back (unused here)
        return add_layernorm(linear(x, w, b), residual, gamma, beta, eps)

    fixed = 2 * 2 * K * N                    # weight tile (double-buffered)
    per_row = 4 * K + 4 * N + 4 * N          # x, residual, out rows (bf16, 2 bufs)
    tm = _pick_tm(M, fixed, per_row)

    kernel = functools.partial(_matmul_add_ln_kernel, eps=eps)
    return pl.pallas_call(
        kernel,
        out_shape=jax.ShapeDtypeStruct((M, N), ACT_DTYPE),
        grid=(M // tm,),
        in_specs=[
            pl.BlockSpec((tm, K), lambda i: (i, 0)),
            pl.BlockSpec((K, N), lambda i: (0, 0)),
            pl.BlockSpec((1, N), lambda i: (0, 0)),
            pl.BlockSpec((tm, N), lambda i: (i, 0)),
            pl.BlockSpec((1, N), lambda i: (0, 0)),
            pl.BlockSpec((1, N), lambda i: (0, 0)),
        ],
        out_specs=pl.BlockSpec((tm, N), lambda i: (i, 0)),
        compiler_params=pltpu.CompilerParams(
            dimension_semantics=("parallel",),
            vmem_limit_bytes=_VMEM_LIMIT),
    )(x, w, b.reshape(1, N).astype(jnp.float32), residual,
      gamma.reshape(1, N).astype(jnp.float32),
      beta.reshape(1, N).astype(jnp.float32))


def _ln_kernel(x_ref, g_ref, b_ref, o_ref, *, eps):
    x = x_ref[...].astype(jnp.float32)
    mu = jnp.mean(x, axis=-1, keepdims=True)
    var = jnp.mean(jnp.square(x - mu), axis=-1, keepdims=True)
    y = (x - mu) * jax.lax.rsqrt(var + eps)
    o_ref[...] = (y * g_ref[...] + b_ref[...]).astype(o_ref.dtype)


def _add_ln_kernel(x_ref, r_ref, g_ref, b_ref, o_ref, *, eps):
    x = x_ref[...].astype(jnp.float32) + r_ref[...].astype(jnp.float32)
    mu = jnp.mean(x, axis=-1, keepdims=True)
    var = jnp.mean(jnp.square(x - mu), axis=-1, keepdims=True)
    y = (x - mu) * jax.lax.rsqrt(var + eps)
    o_ref[...] = (y * g_ref[...] + b_ref[...]).astype(o_ref.dtype)


def layernorm(x, gamma, beta, eps=LN_EPS):
    M, H = x.shape
    tm = _pick_tile(M, 1024, 16)
    kernel = functools.partial(_ln_kernel, eps=eps)
    return pl.pallas_call(
        kernel,
        out_shape=jax.ShapeDtypeStruct((M, H), ACT_DTYPE),
        grid=(M // tm,),
        in_specs=[
            pl.BlockSpec((tm, H), lambda i: (i, 0)),
            pl.BlockSpec((1, H), lambda i: (0, 0)),
            pl.BlockSpec((1, H), lambda i: (0, 0)),
        ],
        out_specs=pl.BlockSpec((tm, H), lambda i: (i, 0)),
        compiler_params=pltpu.CompilerParams(dimension_semantics=("parallel",)),
    )(x, gamma.reshape(1, H).astype(jnp.float32),
      beta.reshape(1, H).astype(jnp.float32))


def add_layernorm(x, residual, gamma, beta, eps=LN_EPS):
    """Standalone fused residual-add + LN (only used by the K>4096 fallback)."""
    M, H = x.shape
    tm = _pick_tile(M, 1024, 16)
    kernel = functools.partial(_add_ln_kernel, eps=eps)
    return pl.pallas_call(
        kernel,
        out_shape=jax.ShapeDtypeStruct((M, H), ACT_DTYPE),
        grid=(M // tm,),
        in_specs=[
            pl.BlockSpec((tm, H), lambda i: (i, 0)),
            pl.BlockSpec((tm, H), lambda i: (i, 0)),
            pl.BlockSpec((1, H), lambda i: (0, 0)),
            pl.BlockSpec((1, H), lambda i: (0, 0)),
        ],
        out_specs=pl.BlockSpec((tm, H), lambda i: (i, 0)),
        compiler_params=pltpu.CompilerParams(dimension_semantics=("parallel",)),
    )(x, residual, gamma.reshape(1, H).astype(jnp.float32),
      beta.reshape(1, H).astype(jnp.float32))


def _mha_kernel(q_ref, k_ref, v_ref, m_ref, o_ref, *,
                heads_per_block, head_dim, scale):
    """Softmax attention for one (batch, head-block, query-tile) grid step.

    q_ref: (tq, hb*Dh)  k_ref/v_ref: (S, hb*Dh)  m_ref: (1, S)  o_ref: (tq, hb*Dh)
    Live score matrix per head is (tq, S) f32; ctx stored directly per head."""
    mask = m_ref[...].astype(jnp.float32)                       # (1, S)
    for h in range(heads_per_block):
        lo = h * head_dim
        # fold 1/sqrt(Dh) into q: O(tq*Dh) instead of O(tq*S) VALU work
        q = (q_ref[:, lo:lo + head_dim].astype(jnp.float32) * scale
             ).astype(k_ref.dtype)                              # (tq, Dh)
        k = k_ref[:, lo:lo + head_dim]                          # (S, Dh)
        v = v_ref[:, lo:lo + head_dim]                          # (S, Dh)
        # q @ k^T without an explicit transpose: contract the last dims.
        s = jax.lax.dot_general(
            q, k, (((1,), (1,)), ((), ())),
            preferred_element_type=jnp.float32)                 # (tq, S) f32
        s = s + mask
        s = s - jnp.max(s, axis=-1, keepdims=True)
        p = jnp.exp(s)
        inv = pl.reciprocal(jnp.sum(p, axis=-1, keepdims=True), approx=True)
        p = p * inv                                             # EUP divide
        ctx = jnp.dot(p.astype(v.dtype), v,
                      preferred_element_type=jnp.float32)       # (tq, Dh)
        o_ref[:, lo:lo + head_dim] = ctx.astype(o_ref.dtype)    # direct store


def attention(qkv, mask_add, *, num_heads):
    """qkv: (B, S, 3H) with columns [Q | K | V], heads contiguous inside each.
    mask_add: (B, 1, S) additive f32 mask.  Returns (B, S, H)."""
    B, S, H3 = qkv.shape
    H = H3 // 3
    head_dim = H // num_heads
    scale = 1.0 / math.sqrt(head_dim)
    tq = _pick_tile(S, 128, 16)                    # bound live (tq, S) scores
    hb = _pick_head_block(num_heads, head_dim)

    if hb is not None:
        # zero-copy path: Q/K/V selected from the fused slab via index_map
        bw = hb * head_dim
        nblk = H // bw
        kernel = functools.partial(_mha_kernel, heads_per_block=hb,
                                   head_dim=head_dim, scale=scale)
        return pl.pallas_call(
            kernel,
            out_shape=jax.ShapeDtypeStruct((B, S, H), qkv.dtype),
            grid=(B, nblk, S // tq),
            in_specs=[
                pl.BlockSpec((None, tq, bw), lambda b, j, t: (b, t, j)),
                pl.BlockSpec((None, S, bw), lambda b, j, t: (b, 0, j + nblk)),
                pl.BlockSpec((None, S, bw), lambda b, j, t: (b, 0, j + 2 * nblk)),
                pl.BlockSpec((None, 1, S), lambda b, j, t: (b, 0, 0)),
            ],
            out_specs=pl.BlockSpec((None, tq, bw), lambda b, j, t: (b, t, j)),
            compiler_params=pltpu.CompilerParams(
                dimension_semantics=("parallel", "parallel", "parallel")),
        )(qkv, qkv, qkv, mask_add)

    # small-model fallback (H not a multiple of 128): materialize Q/K/V slices
    # (cheap at these sizes) and process all heads in one block of width H.
    q = qkv[:, :, :H]
    k = qkv[:, :, H:2 * H]
    v = qkv[:, :, 2 * H:]
    kernel = functools.partial(_mha_kernel, heads_per_block=num_heads,
                               head_dim=head_dim, scale=scale)
    return pl.pallas_call(
        kernel,
        out_shape=jax.ShapeDtypeStruct((B, S, H), qkv.dtype),
        grid=(B, S // tq),
        in_specs=[
            pl.BlockSpec((None, tq, H), lambda b, t: (b, t, 0)),
            pl.BlockSpec((None, S, H), lambda b, t: (b, 0, 0)),
            pl.BlockSpec((None, S, H), lambda b, t: (b, 0, 0)),
            pl.BlockSpec((None, 1, S), lambda b, t: (b, 0, 0)),
        ],
        out_specs=pl.BlockSpec((None, tq, H), lambda b, t: (b, t, 0)),
        compiler_params=pltpu.CompilerParams(
            dimension_semantics=("parallel", "parallel")),
    )(q, k, v, mask_add)


def _pooler_heads_kernel(cls_ref, wp_ref, bp_ref, wh_ref, bh_ref, o_ref):
    """pooled = tanh(cls @ Wp + bp);  out = pooled @ [Wscore|Wawk|Wsubj] + b."""
    pooled = jnp.dot(cls_ref[...], wp_ref[...],
                     preferred_element_type=jnp.float32)
    pooled = jnp.tanh(pooled + bp_ref[...])
    y = jnp.dot(pooled.astype(wh_ref.dtype), wh_ref[...],
                preferred_element_type=jnp.float32)
    o_ref[...] = (y + bh_ref[...]).astype(o_ref.dtype)


def pooler_and_heads(cls_tokens, pool_w, pool_b, heads_w, heads_b):
    B, H = cls_tokens.shape
    NH = heads_w.shape[1]
    return pl.pallas_call(
        _pooler_heads_kernel,
        out_shape=jax.ShapeDtypeStruct((B, NH), jnp.float32),
        grid=(1,),
        in_specs=[
            pl.BlockSpec((B, H), lambda i: (0, 0)),
            pl.BlockSpec((H, H), lambda i: (0, 0)),
            pl.BlockSpec((1, H), lambda i: (0, 0)),
            pl.BlockSpec((H, NH), lambda i: (0, 0)),
            pl.BlockSpec((1, NH), lambda i: (0, 0)),
        ],
        out_specs=pl.BlockSpec((B, NH), lambda i: (0, 0)),
    )(cls_tokens, pool_w, pool_b.reshape(1, H).astype(jnp.float32),
      heads_w, heads_b.reshape(1, NH).astype(jnp.float32))


# --------------------------- parameter creation ------------------------------


def init_params(key, *, vocab, max_pos, hidden, heads, inter, layers,
                num_subjects):
    H = hidden

    def nrm(k, shape, dtype=ACT_DTYPE):
        return (0.02 * jax.random.normal(k, shape, jnp.float32)).astype(dtype)

    keys = iter(jax.random.split(key, 8 + layers * 8))
    p = {
        "word_emb": nrm(next(keys), (vocab, H), jnp.float32),
        "pos_emb": nrm(next(keys), (max_pos, H), jnp.float32),
        "type_emb": nrm(next(keys), (2, H), jnp.float32),
        "emb_ln_g": jnp.ones((H,), jnp.float32),
        "emb_ln_b": jnp.zeros((H,), jnp.float32),
        "pool_w": nrm(next(keys), (H, H)),
        "pool_b": jnp.zeros((H,), jnp.float32),
        # fused classification heads: [score(1) | awkward(2) | subject(N)]
        "heads_w": nrm(next(keys), (H, 1 + 2 + num_subjects)),
        "heads_b": jnp.zeros((1 + 2 + num_subjects,), jnp.float32),
        "layers": [],
    }
    for _ in range(layers):
        lp = {
            # fused Q|K|V projection
            "w_qkv": nrm(next(keys), (H, 3 * H)),
            "b_qkv": jnp.zeros((3 * H,), jnp.float32),
            "wo": nrm(next(keys), (H, H)), "bo": jnp.zeros((H,), jnp.float32),
            "ln1_g": jnp.ones((H,), jnp.float32),
            "ln1_b": jnp.zeros((H,), jnp.float32),
            "wi": nrm(next(keys), (H, inter)),
            "bi": jnp.zeros((inter,), jnp.float32),
            "wf": nrm(next(keys), (inter, H)),
            "bf": jnp.zeros((H,), jnp.float32),
            "ln2_g": jnp.ones((H,), jnp.float32),
            "ln2_b": jnp.zeros((H,), jnp.float32),
        }
        p["layers"].append(lp)
    return p


# ------------------------------- forward pass ---------------------------------


def kobert_extended_forward(params, input_ids, attention_mask, *, hidden, heads):
    B, S = input_ids.shape
    H = hidden
    M = B * S

    # --- embeddings (gather glue, f32) + layernorm kernel (bf16 out) ---
    # token_type_ids default to all-zero (HF behaviour when not provided).
    emb = (jnp.take(params["word_emb"], input_ids, axis=0)
           + params["pos_emb"][None, :S, :]
           + params["type_emb"][0][None, None, :]).reshape(M, H)
    h = layernorm(emb, params["emb_ln_g"], params["emb_ln_b"])

    # additive attention mask (HF convention), f32, shape (B, 1, S)
    mask_add = ((1.0 - attention_mask.astype(jnp.float32)) * (-1e9)
                ).reshape(B, 1, S)

    for lp in params["layers"]:
        # fused QKV projection: one kernel, h read once
        qkv = linear(h, lp["w_qkv"], lp["b_qkv"])               # (M, 3H) bf16
        # attention reads Q/K/V straight out of the (B, S, 3H) slab
        ctx = attention(qkv.reshape(B, S, 3 * H), mask_add, num_heads=heads)
        # attention-output projection with residual-add + LN fused in epilogue
        h = linear_add_ln(ctx.reshape(M, H), lp["wo"], lp["bo"],
                          h, lp["ln1_g"], lp["ln1_b"])
        ff = linear(h, lp["wi"], lp["bi"], activation="gelu")
        # FF-down projection with residual-add + LN fused in epilogue
        h = linear_add_ln(ff, lp["wf"], lp["bf"],
                          h, lp["ln2_g"], lp["ln2_b"])

    # --- pooler (tanh dense on [CLS]) + the three heads, fused in one call ---
    cls = h.reshape(B, S, H)[:, 0, :]
    out = pooler_and_heads(cls, params["pool_w"], params["pool_b"],
                           params["heads_w"], params["heads_b"])
    score = out[:, 0:1]
    awkward = out[:, 1:3]
    subject = out[:, 3:]
    return score, awkward, subject


# ----------------------------------- main --------------------------------------

if __name__ == "__main__":
    # Small synthetic config consistent with the module's forward
    # (real kobert-base: hidden=768, 12 layers, 12 heads, inter=3072).
    B, S = 2, 8
    VOCAB, MAX_POS = 50, 32
    HIDDEN, HEADS, INTER, LAYERS = 32, 2, 64, 2
    NUM_SUBJECTS = 20

    key = jax.random.PRNGKey(0)
    k_param, k_ids = jax.random.split(key)

    params = init_params(
        k_param, vocab=VOCAB, max_pos=MAX_POS, hidden=HIDDEN,
        heads=HEADS, inter=INTER, layers=LAYERS, num_subjects=NUM_SUBJECTS,
    )

    input_ids = jax.random.randint(k_ids, (B, S), 0, VOCAB, dtype=jnp.int32)
    attention_mask = jnp.array(
        [[1, 1, 1, 1, 1, 1, 1, 1],
         [1, 1, 1, 1, 1, 0, 0, 0]], dtype=jnp.int32)

    fwd = jax.jit(functools.partial(kobert_extended_forward,
                                    hidden=HIDDEN, heads=HEADS))
    score, awkward, subject = fwd(params, input_ids, attention_mask)

    jax.block_until_ready((score, awkward, subject))
    assert score.shape == (B, 1)
    assert awkward.shape == (B, 2)
    assert subject.shape == (B, NUM_SUBJECTS)
    assert bool(jnp.all(jnp.isfinite(score)))
    assert bool(jnp.all(jnp.isfinite(awkward)))
    assert bool(jnp.all(jnp.isfinite(subject)))
    print("KERNEL_OK")
</pallas_src>

<mosaic_0001>
module attributes {stable_mosaic.version = 11 : i64} {
  func.func @_ln_kernel(%arg0: i32, %arg1: memref<16x32xf32, #tpu.memory_space<vmem>>, %arg2: memref<1x32xf32, #tpu.memory_space<vmem>>, %arg3: memref<1x32xf32, #tpu.memory_space<vmem>>, %arg4: memref<16x32xbf16, #tpu.memory_space<vmem>>) attributes {dimension_semantics = [#tpu.dimension_semantics<parallel>], iteration_bounds = array<i64: 1>, scalar_prefetch = 0 : i64, scratch_operands = 0 : i64, tpu.core_type = #tpu.core_type<tc>, window_params = [{transform_indices = @transform_0, window_bounds = array<i64: 16, 32>}, {pipeline_mode = #tpu.pipeline_mode<synchronous>, transform_indices = @transform_1, window_bounds = array<i64: 1, 32>}, {pipeline_mode = #tpu.pipeline_mode<synchronous>, transform_indices = @transform_2, window_bounds = array<i64: 1, 32>}, {transform_indices = @transform_3, window_bounds = array<i64: 16, 32>}]} {
    %c0 = arith.constant 0 : index
    %c0_0 = arith.constant 0 : index
    %0 = vector.load %arg1[%c0, %c0_0] : memref<16x32xf32, #tpu.memory_space<vmem>>, vector<16x32xf32>
    %cst = arith.constant dense<0.000000e+00> : vector<16xf32>
    %1 = vector.multi_reduction <add>, %0, %cst [1] : vector<16x32xf32> to vector<16xf32>
    %2 = vector.shape_cast %1 : vector<16xf32> to vector<16x1xf32>
    %cst_1 = arith.constant 3.200000e+01 : f32
    %3 = vector.broadcast %cst_1 : f32 to vector<16x1xf32>
    %4 = arith.divf %2, %3 : vector<16x1xf32>
    %5 = vector.broadcast %4 : vector<16x1xf32> to vector<16x32xf32>
    %6 = arith.subf %0, %5 : vector<16x32xf32>
    %7 = arith.mulf %6, %6 : vector<16x32xf32>
    %cst_2 = arith.constant dense<0.000000e+00> : vector<16xf32>
    %8 = vector.multi_reduction <add>, %7, %cst_2 [1] : vector<16x32xf32> to vector<16xf32>
    %9 = vector.shape_cast %8 : vector<16xf32> to vector<16x1xf32>
    %cst_3 = arith.constant 3.200000e+01 : f32
    %10 = vector.broadcast %cst_3 : f32 to vector<16x1xf32>
    %11 = arith.divf %9, %10 : vector<16x1xf32>
    %12 = vector.broadcast %4 : vector<16x1xf32> to vector<16x32xf32>
    %13 = arith.subf %0, %12 : vector<16x32xf32>
    %cst_4 = arith.constant 9.99999996E-13 : f32
    %14 = vector.broadcast %cst_4 : f32 to vector<16x1xf32>
    %15 = arith.addf %11, %14 : vector<16x1xf32>
    %16 = math.rsqrt %15 : vector<16x1xf32>
    %17 = vector.broadcast %16 : vector<16x1xf32> to vector<16x32xf32>
    %18 = arith.mulf %13, %17 : vector<16x32xf32>
    %c0_5 = arith.constant 0 : index
    %c0_6 = arith.constant 0 : index
    %19 = vector.load %arg2[%c0_5, %c0_6] : memref<1x32xf32, #tpu.memory_space<vmem>>, vector<1x32xf32>
    %20 = vector.broadcast %19 : vector<1x32xf32> to vector<16x32xf32>
    %21 = arith.mulf %18, %20 : vector<16x32xf32>
    %c0_7 = arith.constant 0 : index
    %c0_8 = arith.constant 0 : index
    %22 = vector.load %arg3[%c0_7, %c0_8] : memref<1x32xf32, #tpu.memory_space<vmem>>, vector<1x32xf32>
    %23 = vector.broadcast %22 : vector<1x32xf32> to vector<16x32xf32>
    %24 = arith.addf %21, %23 : vector<16x32xf32>
    %25 = arith.truncf %24 : vector<16x32xf32> to vector<16x32xbf16>
    %c0_9 = arith.constant 0 : index
    %c0_10 = arith.constant 0 : index
    %26 = vector.load %arg4[%c0_9, %c0_10] : memref<16x32xbf16, #tpu.memory_space<vmem>>, vector<16x32xbf16>
    tpu.vector_store %arg4[%c0_9, %c0_10], %25 {strides = array<i32>} : memref<16x32xbf16, #tpu.memory_space<vmem>>, vector<16x32xbf16>,
    return
  }
  func.func @transform_0(%arg0: i32) -> (i32, i32) {
    %c0_i32 = arith.constant 0 : i32
    %c0_i32_0 = arith.constant 0 : i32
    return %arg0, %c0_i32 : i32, i32
  }
  func.func @transform_1(%arg0: i32) -> (i32, i32) {
    %c0_i32 = arith.constant 0 : i32
    %c0_i32_0 = arith.constant 0 : i32
    %c0_i32_1 = arith.constant 0 : i32
    return %c0_i32, %c0_i32_0 : i32, i32
  }
  func.func @transform_2(%arg0: i32) -> (i32, i32) {
    %c0_i32 = arith.constant 0 : i32
    %c0_i32_0 = arith.constant 0 : i32
    %c0_i32_1 = arith.constant 0 : i32
    return %c0_i32, %c0_i32_0 : i32, i32
  }
  func.func @transform_3(%arg0: i32) -> (i32, i32) {
    %c0_i32 = arith.constant 0 : i32
    %c0_i32_0 = arith.constant 0 : i32
    return %arg0, %c0_i32 : i32, i32
  }
}

module attributes {stable_mosaic.version = 11 : i64} {
  func.func @_matmul_bias_kernel(%arg0: i32, %arg1: i32, %arg2: memref<16x32xbf16, #tpu.memory_space<vmem>>, %arg3: memref<32x96xbf16, #tpu.memory_space<vmem>>, %arg4: memref<1x96xf32, #tpu.memory_space<vmem>>, %arg5: memref<16x96xbf16, #tpu.memory_space<vmem>>) attributes {dimension_semantics = [#tpu.dimension_semantics<parallel>, #tpu.dimension_semantics<parallel>], iteration_bounds = array<i64: 1, 1>, scalar_prefetch = 0 : i64, scratch_operands = 0 : i64, tpu.core_type = #tpu.core_type<tc>, window_params = [{transform_indices = @transform_0, window_bounds = array<i64: 16, 32>}, {transform_indices = @transform_1, window_bounds = array<i64: 32, 96>}, {transform_indices = @transform_2, window_bounds = array<i64: 1, 96>}, {transform_indices = @transform_3, window_bounds = array<i64: 16, 96>}]} {
    %c0 = arith.constant 0 : index
    %c0_0 = arith.constant 0 : index
    %0 = vector.load %arg2[%c0, %c0_0] : memref<16x32xbf16, #tpu.memory_space<vmem>>, vector<16x32xbf16>
    %c0_1 = arith.constant 0 : index
    %c0_2 = arith.constant 0 : index
    %1 = vector.load %arg3[%c0_1, %c0_2] : memref<32x96xbf16, #tpu.memory_space<vmem>>, vector<32x96xbf16>
    %cst = arith.constant dense<0.000000e+00> : vector<16x96xf32>
    %2 = tpu.matmul %0, %1, %cst {dimension_numbers = #tpu.dot_dimension_numbers<[1], [0], [0], [1], [0, 0, 1, 1], [], []>} : vector<16x32xbf16>, vector<32x96xbf16>, vector<16x96xf32> -> vector<16x96xf32>
    %c0_3 = arith.constant 0 : index
    %c0_4 = arith.constant 0 : index
    %3 = vector.load %arg4[%c0_3, %c0_4] : memref<1x96xf32, #tpu.memory_space<vmem>>, vector<1x96xf32>
    %4 = vector.broadcast %3 : vector<1x96xf32> to vector<16x96xf32>
    %5 = arith.addf %2, %4 : vector<16x96xf32>
    %6 = arith.truncf %5 : vector<16x96xf32> to vector<16x96xbf16>
    %c0_5 = arith.constant 0 : index
    %c0_6 = arith.constant 0 : index
    %7 = vector.load %arg5[%c0_5, %c0_6] : memref<16x96xbf16, #tpu.memory_space<vmem>>, vector<16x96xbf16>
    tpu.vector_store %arg5[%c0_5, %c0_6], %6 {strides = array<i32>} : memref<16x96xbf16, #tpu.memory_space<vmem>>, vector<16x96xbf16>,
    return
  }
  func.func @transform_0(%arg0: i32, %arg1: i32) -> (i32, i32) {
    %c0_i32 = arith.constant 0 : i32
    %c0_i32_0 = arith.constant 0 : i32
    return %arg0, %c0_i32 : i32, i32
  }
  func.func @transform_1(%arg0: i32, %arg1: i32) -> (i32, i32) {
    %c0_i32 = arith.constant 0 : i32
    %c0_i32_0 = arith.constant 0 : i32
    return %c0_i32, %arg1 : i32, i32
  }
  func.func @transform_2(%arg0: i32, %arg1: i32) -> (i32, i32) {
    %c0_i32 = arith.constant 0 : i32
    %c0_i32_0 = arith.constant 0 : i32
    return %c0_i32, %arg1 : i32, i32
  }
  func.func @transform_3(%arg0: i32, %arg1: i32) -> (i32, i32) {
    %c0_i32 = arith.constant 0 : i32
    return %arg0, %arg1 : i32, i32
  }
}

module attributes {stable_mosaic.version = 11 : i64} {
  func.func @_matmul_add_ln_kernel(%arg0: i32, %arg1: memref<16x32xbf16, #tpu.memory_space<vmem>>, %arg2: memref<32x32xbf16, #tpu.memory_space<vmem>>, %arg3: memref<1x32xf32, #tpu.memory_space<vmem>>, %arg4: memref<16x32xbf16, #tpu.memory_space<vmem>>, %arg5: memref<1x32xf32, #tpu.memory_space<vmem>>, %arg6: memref<1x32xf32, #tpu.memory_space<vmem>>, %arg7: memref<16x32xbf16, #tpu.memory_space<vmem>>) attributes {dimension_semantics = [#tpu.dimension_semantics<parallel>], iteration_bounds = array<i64: 1>, scalar_prefetch = 0 : i64, scratch_operands = 0 : i64, tpu.core_type = #tpu.core_type<tc>, window_params = [{transform_indices = @transform_0, window_bounds = array<i64: 16, 32>}, {pipeline_mode = #tpu.pipeline_mode<synchronous>, transform_indices = @transform_1, window_bounds = array<i64: 32, 32>}, {pipeline_mode = #tpu.pipeline_mode<synchronous>, transform_indices = @transform_2, window_bounds = array<i64: 1, 32>}, {transform_indices = @transform_3, window_bounds = array<i64: 16, 32>}, {pipeline_mode = #tpu.pipeline_mode<synchronous>, transform_indices = @transform_4, window_bounds = array<i64: 1, 32>}, {pipeline_mode = #tpu.pipeline_mode<synchronous>, transform_indices = @transform_5, window_bounds = array<i64: 1, 32>}, {transform_indices = @transform_6, window_bounds = array<i64: 16, 32>}]} {
    %c0 = arith.constant 0 : index
    %c0_0 = arith.constant 0 : index
    %0 = vector.load %arg1[%c0, %c0_0] : memref<16x32xbf16, #tpu.memory_space<vmem>>, vector<16x32xbf16>
    %c0_1 = arith.constant 0 : index
    %c0_2 = arith.constant 0 : index
    %1 = vector.load %arg2[%c0_1, %c0_2] : memref<32x32xbf16, #tpu.memory_space<vmem>>, vector<32x32xbf16>
    %cst = arith.constant dense<0.000000e+00> : vector<16x32xf32>
    %2 = tpu.matmul %0, %1, %cst {dimension_numbers = #tpu.dot_dimension_numbers<[1], [0], [0], [1], [0, 0, 1, 1], [], []>} : vector<16x32xbf16>, vector<32x32xbf16>, vector<16x32xf32> -> vector<16x32xf32>
    %c0_3 = arith.constant 0 : index
    %c0_4 = arith.constant 0 : index
    %3 = vector.load %arg3[%c0_3, %c0_4] : memref<1x32xf32, #tpu.memory_space<vmem>>, vector<1x32xf32>
    %4 = vector.broadcast %3 : vector<1x32xf32> to vector<16x32xf32>
    %5 = arith.addf %2, %4 : vector<16x32xf32>
    %c0_5 = arith.constant 0 : index
    %c0_6 = arith.constant 0 : index
    %6 = vector.load %arg4[%c0_5, %c0_6] : memref<16x32xbf16, #tpu.memory_space<vmem>>, vector<16x32xbf16>
    %7 = arith.extf %6 : vector<16x32xbf16> to vector<16x32xf32>
    %8 = arith.addf %5, %7 : vector<16x32xf32>
    %cst_7 = arith.constant dense<0.000000e+00> : vector<16xf32>
    %9 = vector.multi_reduction <add>, %8, %cst_7 [1] : vector<16x32xf32> to vector<16xf32>
    %10 = vector.shape_cast %9 : vector<16xf32> to vector<16x1xf32>
    %cst_8 = arith.constant 3.200000e+01 : f32
    %11 = vector.broadcast %cst_8 : f32 to vector<16x1xf32>
    %12 = arith.divf %10, %11 : vector<16x1xf32>
    %13 = vector.broadcast %12 : vector<16x1xf32> to vector<16x32xf32>
    %14 = arith.subf %8, %13 : vector<16x32xf32>
    %15 = arith.mulf %14, %14 : vector<16x32xf32>
    %cst_9 = arith.constant dense<0.000000e+00> : vector<16xf32>
    %16 = vector.multi_reduction <add>, %15, %cst_9 [1] : vector<16x32xf32> to vector<16xf32>
    %17 = vector.shape_cast %16 : vector<16xf32> to vector<16x1xf32>
    %cst_10 = arith.constant 3.200000e+01 : f32
    %18 = vector.broadcast %cst_10 : f32 to vector<16x1xf32>
    %19 = arith.divf %17, %18 : vector<16x1xf32>
    %20 = vector.broadcast %12 : vector<16x1xf32> to vector<16x32xf32>
    %21 = arith.subf %8, %20 : vector<16x32xf32>
    %cst_11 = arith.constant 9.99999996E-13 : f32
    %22 = vector.broadcast %cst_11 : f32 to vector<16x1xf32>
    %23 = arith.addf %19, %22 : vector<16x1xf32>
    %24 = math.rsqrt %23 : vector<16x1xf32>
    %25 = vector.broadcast %24 : vector<16x1xf32> to vector<16x32xf32>
    %26 = arith.mulf %21, %25 : vector<16x32xf32>
    %c0_12 = arith.constant 0 : index
    %c0_13 = arith.constant 0 : index
    %27 = vector.load %arg5[%c0_12, %c0_13] : memref<1x32xf32, #tpu.memory_space<vmem>>, vector<1x32xf32>
    %28 = vector.broadcast %27 : vector<1x32xf32> to vector<16x32xf32>
    %29 = arith.mulf %26, %28 : vector<16x32xf32>
    %c0_14 = arith.constant 0 : index
    %c0_15 = arith.constant 0 : index
    %30 = vector.load %arg6[%c0_14, %c0_15] : memref<1x32xf32, #tpu.memory_space<vmem>>, vector<1x32xf32>
    %31 = vector.broadcast %30 : vector<1x32xf32> to vector<16x32xf32>
    %32 = arith.addf %29, %31 : vector<16x32xf32>
    %33 = arith.truncf %32 : vector<16x32xf32> to vector<16x32xbf16>
    %c0_16 = arith.constant 0 : index
    %c0_17 = arith.constant 0 : index
    %34 = vector.load %arg7[%c0_16, %c0_17] : memref<16x32xbf16, #tpu.memory_space<vmem>>, vector<16x32xbf16>
    tpu.vector_store %arg7[%c0_16, %c0_17], %33 {strides = array<i32>} : memref<16x32xbf16, #tpu.memory_space<vmem>>, vector<16x32xbf16>,
    return
  }
  func.func @transform_0(%arg0: i32) -> (i32, i32) {
    %c0_i32 = arith.constant 0 : i32
    %c0_i32_0 = arith.constant 0 : i32
    return %arg0, %c0_i32 : i32, i32
  }
  func.func @transform_1(%arg0: i32) -> (i32, i32) {
    %c0_i32 = arith.constant 0 : i32
    %c0_i32_0 = arith.constant 0 : i32
    %c0_i32_1 = arith.constant 0 : i32
    return %c0_i32, %c0_i32_0 : i32, i32
  }
  func.func @transform_2(%arg0: i32) -> (i32, i32) {
    %c0_i32 = arith.constant 0 : i32
    %c0_i32_0 = arith.constant 0 : i32
    %c0_i32_1 = arith.constant 0 : i32
    return %c0_i32, %c0_i32_0 : i32, i32
  }
  func.func @transform_3(%arg0: i32) -> (i32, i32) {
    %c0_i32 = arith.constant 0 : i32
    %c0_i32_0 = arith.constant 0 : i32
    return %arg0, %c0_i32 : i32, i32
  }
  func.func @transform_4(%arg0: i32) -> (i32, i32) {
    %c0_i32 = arith.constant 0 : i32
    %c0_i32_0 = arith.constant 0 : i32
    %c0_i32_1 = arith.constant 0 : i32
    return %c0_i32, %c0_i32_0 : i32, i32
  }
  func.func @transform_5(%arg0: i32) -> (i32, i32) {
    %c0_i32 = arith.constant 0 : i32
    %c0_i32_0 = arith.constant 0 : i32
    %c0_i32_1 = arith.constant 0 : i32
    return %c0_i32, %c0_i32_0 : i32, i32
  }
  func.func @transform_6(%arg0: i32) -> (i32, i32) {
    %c0_i32 = arith.constant 0 : i32
    %c0_i32_0 = arith.constant 0 : i32
    return %arg0, %c0_i32 : i32, i32
  }
}

module attributes {stable_mosaic.version = 11 : i64} {
  func.func @_mha_kernel(%arg0: i32, %arg1: i32, %arg2: memref<1x8x32xbf16, #tpu.memory_space<vmem>>, %arg3: memref<1x8x32xbf16, #tpu.memory_space<vmem>>, %arg4: memref<1x8x32xbf16, #tpu.memory_space<vmem>>, %arg5: memref<1x1x8xf32, #tpu.memory_space<vmem>>, %arg6: memref<1x8x32xbf16, #tpu.memory_space<vmem>>) attributes {dimension_semantics = [#tpu.dimension_semantics<parallel>, #tpu.dimension_semantics<parallel>], iteration_bounds = array<i64: 2, 1>, scalar_prefetch = 0 : i64, scratch_operands = 0 : i64, tpu.core_type = #tpu.core_type<tc>, window_params = [{transform_indices = @transform_0, window_bounds = array<i64: 1, 8, 32>}, {transform_indices = @transform_1, window_bounds = array<i64: 1, 8, 32>}, {transform_indices = @transform_2, window_bounds = array<i64: 1, 8, 32>}, {transform_indices = @transform_3, window_bounds = array<i64: 1, 1, 8>}, {transform_indices = @transform_4, window_bounds = array<i64: 1, 8, 32>}]} {
    %c0 = arith.constant 0 : index
    %c0_0 = arith.constant 0 : index
    %c0_1 = arith.constant 0 : index
    %0 = vector.load %arg5[%c0, %c0_0, %c0_1] : memref<1x1x8xf32, #tpu.memory_space<vmem>>, vector<1x1x8xf32>
    %1 = vector.shape_cast %0 : vector<1x1x8xf32> to vector<1x8xf32>
    %c0_2 = arith.constant 0 : index
    %c0_3 = arith.constant 0 : index
    %c0_4 = arith.constant 0 : index
    %2 = vector.load %arg2[%c0_2, %c0_3, %c0_4] : memref<1x8x32xbf16, #tpu.memory_space<vmem>>, vector<1x8x16xbf16>
    %3 = vector.shape_cast %2 : vector<1x8x16xbf16> to vector<8x16xbf16>
    %4 = arith.extf %3 : vector<8x16xbf16> to vector<8x16xf32>
    %cst = arith.constant 2.500000e-01 : f32
    %5 = vector.broadcast %cst : f32 to vector<8x16xf32>
    %6 = arith.mulf %4, %5 : vector<8x16xf32>
    %7 = arith.truncf %6 : vector<8x16xf32> to vector<8x16xbf16>
    %c0_5 = arith.constant 0 : index
    %c0_6 = arith.constant 0 : index
    %c0_7 = arith.constant 0 : index
    %8 = vector.load %arg3[%c0_5, %c0_6, %c0_7] : memref<1x8x32xbf16, #tpu.memory_space<vmem>>, vector<1x8x16xbf16>
    %9 = vector.shape_cast %8 : vector<1x8x16xbf16> to vector<8x16xbf16>
    %c0_8 = arith.constant 0 : index
    %c0_9 = arith.constant 0 : index
    %c0_10 = arith.constant 0 : index
    %10 = vector.load %arg4[%c0_8, %c0_9, %c0_10] : memref<1x8x32xbf16, #tpu.memory_space<vmem>>, vector<1x8x16xbf16>
    %11 = vector.shape_cast %10 : vector<1x8x16xbf16> to vector<8x16xbf16>
    %cst_11 = arith.constant dense<0.000000e+00> : vector<8x8xf32>
    %12 = tpu.matmul %7, %9, %cst_11 {dimension_numbers = #tpu.dot_dimension_numbers<[1], [1], [0], [0], [0, 0, 1, 0], [], []>} : vector<8x16xbf16>, vector<8x16xbf16>, vector<8x8xf32> -> vector<8x8xf32>
    %13 = vector.broadcast %1 : vector<1x8xf32> to vector<8x8xf32>
    %14 = arith.addf %12, %13 : vector<8x8xf32>
    %cst_12 = arith.constant dense<0xFF800000> : vector<8xf32>
    %15 = vector.multi_reduction <maximumf>, %14, %cst_12 [1] : vector<8x8xf32> to vector<8xf32>
    %16 = vector.shape_cast %15 : vector<8xf32> to vector<8x1xf32>
    %17 = vector.broadcast %16 : vector<8x1xf32> to vector<8x8xf32>
    %18 = arith.subf %14, %17 : vector<8x8xf32>
    %19 = math.exp %18 : vector<8x8xf32>
    %cst_13 = arith.constant dense<0.000000e+00> : vector<8xf32>
    %20 = vector.multi_reduction <add>, %19, %cst_13 [1] : vector<8x8xf32> to vector<8xf32>
    %21 = vector.shape_cast %20 : vector<8xf32> to vector<8x1xf32>
    %22 = tpu.reciprocal %21 {approx = true} : vector<8x1xf32> -> vector<8x1xf32>
    %23 = vector.broadcast %22 : vector<8x1xf32> to vector<8x8xf32>
    %24 = arith.mulf %19, %23 : vector<8x8xf32>
    %25 = arith.truncf %24 : vector<8x8xf32> to vector<8x8xbf16>
    %cst_14 = arith.constant dense<0.000000e+00> : vector<8x16xf32>
    %26 = tpu.matmul %25, %11, %cst_14 {dimension_numbers = #tpu.dot_dimension_numbers<[1], [0], [0], [1], [0, 0, 1, 1], [], []>} : vector<8x8xbf16>, vector<8x16xbf16>, vector<8x16xf32> -> vector<8x16xf32>
    %27 = arith.truncf %26 : vector<8x16xf32> to vector<8x16xbf16>
    %c0_15 = arith.constant 0 : index
    %c0_16 = arith.constant 0 : index
    %c0_17 = arith.constant 0 : index
    %28 = vector.load %arg6[%c0_15, %c0_16, %c0_17] : memref<1x8x32xbf16, #tpu.memory_space<vmem>>, vector<1x8x16xbf16>
    %29 = vector.shape_cast %28 : vector<1x8x16xbf16> to vector<8x16xbf16>
    %30 = vector.shape_cast %27 : vector<8x16xbf16> to vector<1x8x16xbf16>
    tpu.vector_store %arg6[%c0_15, %c0_16, %c0_17], %30 {strides = array<i32>} : memref<1x8x32xbf16, #tpu.memory_space<vmem>>, vector<1x8x16xbf16>,
    %c0_18 = arith.constant 0 : index
    %c0_19 = arith.constant 0 : index
    %c16 = arith.constant 16 : index
    %31 = vector.load %arg2[%c0_18, %c0_19, %c16] : memref<1x8x32xbf16, #tpu.memory_space<vmem>>, vector<1x8x16xbf16>
    %32 = vector.shape_cast %31 : vector<1x8x16xbf16> to vector<8x16xbf16>
    %33 = arith.extf %32 : vector<8x16xbf16> to vector<8x16xf32>
    %cst_20 = arith.constant 2.500000e-01 : f32
    %34 = vector.broadcast %cst_20 : f32 to vector<8x16xf32>
    %35 = arith.mulf %33, %34 : vector<8x16xf32>
    %36 = arith.truncf %35 : vector<8x16xf32> to vector<8x16xbf16>
    %c0_21 = arith.constant 0 : index
    %c0_22 = arith.constant 0 : index
    %c16_23 = arith.constant 16 : index
    %37 = vector.load %arg3[%c0_21, %c0_22, %c16_23] : memref<1x8x32xbf16, #tpu.memory_space<vmem>>, vector<1x8x16xbf16>
    %38 = vector.shape_cast %37 : vector<1x8x16xbf16> to vector<8x16xbf16>
    %c0_24 = arith.constant 0 : index
    %c0_25 = arith.constant 0 : index
    %c16_26 = arith.constant 16 : index
    %39 = vector.load %arg4[%c0_24, %c0_25, %c16_26] : memref<1x8x32xbf16, #tpu.memory_space<vmem>>, vector<1x8x16xbf16>
    %40 = vector.shape_cast %39 : vector<1x8x16xbf16> to vector<8x16xbf16>
    %cst_27 = arith.constant dense<0.000000e+00> : vector<8x8xf32>
    %41 = tpu.matmul %36, %38, %cst_27 {dimension_numbers = #tpu.dot_dimension_numbers<[1], [1], [0], [0], [0, 0, 1, 0], [], []>} : vector<8x16xbf16>, vector<8x16xbf16>, vector<8x8xf32> -> vector<8x8xf32>
    %42 = vector.broadcast %1 : vector<1x8xf32> to vector<8x8xf32>
    %43 = arith.addf %41, %42 : vector<8x8xf32>
    %cst_28 = arith.constant dense<0xFF800000> : vector<8xf32>
    %44 = vector.multi_reduction <maximumf>, %43, %cst_28 [1] : vector<8x8xf32> to vector<8xf32>
    %45 = vector.shape_cast %44 : vector<8xf32> to vector<8x1xf32>
    %46 = vector.broadcast %45 : vector<8x1xf32> to vector<8x8xf32>
    %47 = arith.subf %43, %46 : vector<8x8xf32>
    %48 = math.exp %47 : vector<8x8xf32>
    %cst_29 = arith.constant dense<0.000000e+00> : vector<8xf32>
    %49 = vector.multi_reduction <add>, %48, %cst_29 [1] : vector<8x8xf32> to vector<8xf32>
    %50 = vector.shape_cast %49 : vector<8xf32> to vector<8x1xf32>
    %51 = tpu.reciprocal %50 {approx = true} : vector<8x1xf32> -> vector<8x1xf32>
    %52 = vector.broadcast %51 : vector<8x1xf32> to vector<8x8xf32>
    %53 = arith.mulf %48, %52 : vector<8x8xf32>
    %54 = arith.truncf %53 : vector<8x8xf32> to vector<8x8xbf16>
    %cst_30 = arith.constant dense<0.000000e+00> : vector<8x16xf32>
    %55 = tpu.matmul %54, %40, %cst_30 {dimension_numbers = #tpu.dot_dimension_numbers<[1], [0], [0], [1], [0, 0, 1, 1], [], []>} : vector<8x8xbf16>, vector<8x16xbf16>, vector<8x16xf32> -> vector<8x16xf32>
    %56 = arith.truncf %55 : vector<8x16xf32> to vector<8x16xbf16>
    %c0_31 = arith.constant 0 : index
    %c0_32 = arith.constant 0 : index
    %c16_33 = arith.constant 16 : index
    %57 = vector.load %arg6[%c0_31, %c0_32, %c16_33] : memref<1x8x32xbf16, #tpu.memory_space<vmem>>, vector<1x8x16xbf16>
    %58 = vector.shape_cast %57 : vector<1x8x16xbf16> to vector<8x16xbf16>
    %59 = vector.shape_cast %56 : vector<8x16xbf16> to vector<1x8x16xbf16>
    tpu.vector_store %arg6[%c0_31, %c0_32, %c16_33], %59 {strides = array<i32>} : memref<1x8x32xbf16, #tpu.memory_space<vmem>>, vector<1x8x16xbf16>,
    return
  }
  func.func @transform_0(%arg0: i32, %arg1: i32) -> (i32, i32, i32) {
    %c0_i32 = arith.constant 0 : i32
    %c0_i32_0 = arith.constant 0 : i32
    return %arg0, %arg1, %c0_i32 : i32, i32, i32
  }
  func.func @transform_1(%arg0: i32, %arg1: i32) -> (i32, i32, i32) {
    %c0_i32 = arith.constant 0 : i32
    %c0_i32_0 = arith.constant 0 : i32
    %c0_i32_1 = arith.constant 0 : i32
    return %arg0, %c0_i32, %c0_i32_0 : i32, i32, i32
  }
  func.func @transform_2(%arg0: i32, %arg1: i32) -> (i32, i32, i32) {
    %c0_i32 = arith.constant 0 : i32
    %c0_i32_0 = arith.constant 0 : i32
    %c0_i32_1 = arith.constant 0 : i32
    return %arg0, %c0_i32, %c0_i32_0 : i32, i32, i32
  }
  func.func @transform_3(%arg0: i32, %arg1: i32) -> (i32, i32, i32) {
    %c0_i32 = arith.constant 0 : i32
    %c0_i32_0 = arith.constant 0 : i32
    %c0_i32_1 = arith.constant 0 : i32
    return %arg0, %c0_i32, %c0_i32_0 : i32, i32, i32
  }
  func.func @transform_4(%arg0: i32, %arg1: i32) -> (i32, i32, i32) {
    %c0_i32 = arith.constant 0 : i32
    %c0_i32_0 = arith.constant 0 : i32
    return %arg0, %arg1, %c0_i32 : i32, i32, i32
  }
}

module attributes {stable_mosaic.version = 11 : i64} {
  func.func @_matmul_bias_kernel(%arg0: i32, %arg1: i32, %arg2: memref<16x32xbf16, #tpu.memory_space<vmem>>, %arg3: memref<32x64xbf16, #tpu.memory_space<vmem>>, %arg4: memref<1x64xf32, #tpu.memory_space<vmem>>, %arg5: memref<16x64xbf16, #tpu.memory_space<vmem>>) attributes {dimension_semantics = [#tpu.dimension_semantics<parallel>, #tpu.dimension_semantics<parallel>], iteration_bounds = array<i64: 1, 1>, scalar_prefetch = 0 : i64, scratch_operands = 0 : i64, tpu.core_type = #tpu.core_type<tc>, window_params = [{transform_indices = @transform_0, window_bounds = array<i64: 16, 32>}, {transform_indices = @transform_1, window_bounds = array<i64: 32, 64>}, {transform_indices = @transform_2, window_bounds = array<i64: 1, 64>}, {transform_indices = @transform_3, window_bounds = array<i64: 16, 64>}]} {
    %c0 = arith.constant 0 : index
    %c0_0 = arith.constant 0 : index
    %0 = vector.load %arg2[%c0, %c0_0] : memref<16x32xbf16, #tpu.memory_space<vmem>>, vector<16x32xbf16>
    %c0_1 = arith.constant 0 : index
    %c0_2 = arith.constant 0 : index
    %1 = vector.load %arg3[%c0_1, %c0_2] : memref<32x64xbf16, #tpu.memory_space<vmem>>, vector<32x64xbf16>
    %cst = arith.constant dense<0.000000e+00> : vector<16x64xf32>
    %2 = tpu.matmul %0, %1, %cst {dimension_numbers = #tpu.dot_dimension_numbers<[1], [0], [0], [1], [0, 0, 1, 1], [], []>} : vector<16x32xbf16>, vector<32x64xbf16>, vector<16x64xf32> -> vector<16x64xf32>
    %c0_3 = arith.constant 0 : index
    %c0_4 = arith.constant 0 : index
    %3 = vector.load %arg4[%c0_3, %c0_4] : memref<1x64xf32, #tpu.memory_space<vmem>>, vector<1x64xf32>
    %4 = vector.broadcast %3 : vector<1x64xf32> to vector<16x64xf32>
    %5 = arith.addf %2, %4 : vector<16x64xf32>
    %6 = arith.mulf %5, %5 : vector<16x64xf32>
    %7 = arith.mulf %5, %6 : vector<16x64xf32>
    %cst_5 = arith.constant 4.471500e-02 : f32
    %8 = vector.broadcast %cst_5 : f32 to vector<16x64xf32>
    %9 = arith.mulf %8, %7 : vector<16x64xf32>
    %10 = arith.addf %5, %9 : vector<16x64xf32>
    %cst_6 = arith.constant 0.797884583 : f32
    %11 = vector.broadcast %cst_6 : f32 to vector<16x64xf32>
    %12 = arith.mulf %11, %10 : vector<16x64xf32>
    %13 = math.tanh %12 : vector<16x64xf32>
    %cst_7 = arith.constant 1.000000e+00 : f32
    %14 = vector.broadcast %cst_7 : f32 to vector<16x64xf32>
    %15 = arith.addf %14, %13 : vector<16x64xf32>
    %cst_8 = arith.constant 5.000000e-01 : f32
    %16 = vector.broadcast %cst_8 : f32 to vector<16x64xf32>
    %17 = arith.mulf %16, %15 : vector<16x64xf32>
    %18 = arith.mulf %5, %17 : vector<16x64xf32>
    %19 = arith.truncf %18 : vector<16x64xf32> to vector<16x64xbf16>
    %c0_9 = arith.constant 0 : index
    %c0_10 = arith.constant 0 : index
    %20 = vector.load %arg5[%c0_9, %c0_10] : memref<16x64xbf16, #tpu.memory_space<vmem>>, vector<16x64xbf16>
    tpu.vector_store %arg5[%c0_9, %c0_10], %19 {strides = array<i32>} : memref<16x64xbf16, #tpu.memory_space<vmem>>, vector<16x64xbf16>,
    return
  }
  func.func @transform_0(%arg0: i32, %arg1: i32) -> (i32, i32) {
    %c0_i32 = arith.constant 0 : i32
    %c0_i32_0 = arith.constant 0 : i32
    return %arg0, %c0_i32 : i32, i32
  }
  func.func @transform_1(%arg0: i32, %arg1: i32) -> (i32, i32) {
    %c0_i32 = arith.constant 0 : i32
    %c0_i32_0 = arith.constant 0 : i32
    return %c0_i32, %arg1 : i32, i32
  }
  func.func @transform_2(%arg0: i32, %arg1: i32) -> (i32, i32) {
    %c0_i32 = arith.constant 0 : i32
    %c0_i32_0 = arith.constant 0 : i32
    return %c0_i32, %arg1 : i32, i32
  }
  func.func @transform_3(%arg0: i32, %arg1: i32) -> (i32, i32) {
    %c0_i32 = arith.constant 0 : i32
    return %arg0, %arg1 : i32, i32
  }
}

module attributes {stable_mosaic.version = 11 : i64} {
  func.func @_matmul_add_ln_kernel(%arg0: i32, %arg1: memref<16x64xbf16, #tpu.memory_space<vmem>>, %arg2: memref<64x32xbf16, #tpu.memory_space<vmem>>, %arg3: memref<1x32xf32, #tpu.memory_space<vmem>>, %arg4: memref<16x32xbf16, #tpu.memory_space<vmem>>, %arg5: memref<1x32xf32, #tpu.memory_space<vmem>>, %arg6: memref<1x32xf32, #tpu.memory_space<vmem>>, %arg7: memref<16x32xbf16, #tpu.memory_space<vmem>>) attributes {dimension_semantics = [#tpu.dimension_semantics<parallel>], iteration_bounds = array<i64: 1>, scalar_prefetch = 0 : i64, scratch_operands = 0 : i64, tpu.core_type = #tpu.core_type<tc>, window_params = [{transform_indices = @transform_0, window_bounds = array<i64: 16, 64>}, {pipeline_mode = #tpu.pipeline_mode<synchronous>, transform_indices = @transform_1, window_bounds = array<i64: 64, 32>}, {pipeline_mode = #tpu.pipeline_mode<synchronous>, transform_indices = @transform_2, window_bounds = array<i64: 1, 32>}, {transform_indices = @transform_3, window_bounds = array<i64: 16, 32>}, {pipeline_mode = #tpu.pipeline_mode<synchronous>, transform_indices = @transform_4, window_bounds = array<i64: 1, 32>}, {pipeline_mode = #tpu.pipeline_mode<synchronous>, transform_indices = @transform_5, window_bounds = array<i64: 1, 32>}, {transform_indices = @transform_6, window_bounds = array<i64: 16, 32>}]} {
    %c0 = arith.constant 0 : index
    %c0_0 = arith.constant 0 : index
    %0 = vector.load %arg1[%c0, %c0_0] : memref<16x64xbf16, #tpu.memory_space<vmem>>, vector<16x64xbf16>
    %c0_1 = arith.constant 0 : index
    %c0_2 = arith.constant 0 : index
    %1 = vector.load %arg2[%c0_1, %c0_2] : memref<64x32xbf16, #tpu.memory_space<vmem>>, vector<64x32xbf16>
    %cst = arith.constant dense<0.000000e+00> : vector<16x32xf32>
    %2 = tpu.matmul %0, %1, %cst {dimension_numbers = #tpu.dot_dimension_numbers<[1], [0], [0], [1], [0, 0, 1, 1], [], []>} : vector<16x64xbf16>, vector<64x32xbf16>, vector<16x32xf32> -> vector<16x32xf32>
    %c0_3 = arith.constant 0 : index
    %c0_4 = arith.constant 0 : index
    %3 = vector.load %arg3[%c0_3, %c0_4] : memref<1x32xf32, #tpu.memory_space<vmem>>, vector<1x32xf32>
    %4 = vector.broadcast %3 : vector<1x32xf32> to vector<16x32xf32>
    %5 = arith.addf %2, %4 : vector<16x32xf32>
    %c0_5 = arith.constant 0 : index
    %c0_6 = arith.constant 0 : index
    %6 = vector.load %arg4[%c0_5, %c0_6] : memref<16x32xbf16, #tpu.memory_space<vmem>>, vector<16x32xbf16>
    %7 = arith.extf %6 : vector<16x32xbf16> to vector<16x32xf32>
    %8 = arith.addf %5, %7 : vector<16x32xf32>
    %cst_7 = arith.constant dense<0.000000e+00> : vector<16xf32>
    %9 = vector.multi_reduction <add>, %8, %cst_7 [1] : vector<16x32xf32> to vector<16xf32>
    %10 = vector.shape_cast %9 : vector<16xf32> to vector<16x1xf32>
    %cst_8 = arith.constant 3.200000e+01 : f32
    %11 = vector.broadcast %cst_8 : f32 to vector<16x1xf32>
    %12 = arith.divf %10, %11 : vector<16x1xf32>
    %13 = vector.broadcast %12 : vector<16x1xf32> to vector<16x32xf32>
    %14 = arith.subf %8, %13 : vector<16x32xf32>
    %15 = arith.mulf %14, %14 : vector<16x32xf32>
    %cst_9 = arith.constant dense<0.000000e+00> : vector<16xf32>
    %16 = vector.multi_reduction <add>, %15, %cst_9 [1] : vector<16x32xf32> to vector<16xf32>
    %17 = vector.shape_cast %16 : vector<16xf32> to vector<16x1xf32>
    %cst_10 = arith.constant 3.200000e+01 : f32
    %18 = vector.broadcast %cst_10 : f32 to vector<16x1xf32>
    %19 = arith.divf %17, %18 : vector<16x1xf32>
    %20 = vector.broadcast %12 : vector<16x1xf32> to vector<16x32xf32>
    %21 = arith.subf %8, %20 : vector<16x32xf32>
    %cst_11 = arith.constant 9.99999996E-13 : f32
    %22 = vector.broadcast %cst_11 : f32 to vector<16x1xf32>
    %23 = arith.addf %19, %22 : vector<16x1xf32>
    %24 = math.rsqrt %23 : vector<16x1xf32>
    %25 = vector.broadcast %24 : vector<16x1xf32> to vector<16x32xf32>
    %26 = arith.mulf %21, %25 : vector<16x32xf32>
    %c0_12 = arith.constant 0 : index
    %c0_13 = arith.constant 0 : index
    %27 = vector.load %arg5[%c0_12, %c0_13] : memref<1x32xf32, #tpu.memory_space<vmem>>, vector<1x32xf32>
    %28 = vector.broadcast %27 : vector<1x32xf32> to vector<16x32xf32>
    %29 = arith.mulf %26, %28 : vector<16x32xf32>
    %c0_14 = arith.constant 0 : index
    %c0_15 = arith.constant 0 : index
    %30 = vector.load %arg6[%c0_14, %c0_15] : memref<1x32xf32, #tpu.memory_space<vmem>>, vector<1x32xf32>
    %31 = vector.broadcast %30 : vector<1x32xf32> to vector<16x32xf32>
    %32 = arith.addf %29, %31 : vector<16x32xf32>
    %33 = arith.truncf %32 : vector<16x32xf32> to vector<16x32xbf16>
    %c0_16 = arith.constant 0 : index
    %c0_17 = arith.constant 0 : index
    %34 = vector.load %arg7[%c0_16, %c0_17] : memref<16x32xbf16, #tpu.memory_space<vmem>>, vector<16x32xbf16>
    tpu.vector_store %arg7[%c0_16, %c0_17], %33 {strides = array<i32>} : memref<16x32xbf16, #tpu.memory_space<vmem>>, vector<16x32xbf16>,
    return
  }
  func.func @transform_0(%arg0: i32) -> (i32, i32) {
    %c0_i32 = arith.constant 0 : i32
    %c0_i32_0 = arith.constant 0 : i32
    return %arg0, %c0_i32 : i32, i32
  }
  func.func @transform_1(%arg0: i32) -> (i32, i32) {
    %c0_i32 = arith.constant 0 : i32
    %c0_i32_0 = arith.constant 0 : i32
    %c0_i32_1 = arith.constant 0 : i32
    return %c0_i32, %c0_i32_0 : i32, i32
  }
  func.func @transform_2(%arg0: i32) -> (i32, i32) {
    %c0_i32 = arith.constant 0 : i32
    %c0_i32_0 = arith.constant 0 : i32
    %c0_i32_1 = arith.constant 0 : i32
    return %c0_i32, %c0_i32_0 : i32, i32
  }
  func.func @transform_3(%arg0: i32) -> (i32, i32) {
    %c0_i32 = arith.constant 0 : i32
    %c0_i32_0 = arith.constant 0 : i32
    return %arg0, %c0_i32 : i32, i32
  }
  func.func @transform_4(%arg0: i32) -> (i32, i32) {
    %c0_i32 = arith.constant 0 : i32
    %c0_i32_0 = arith.constant 0 : i32
    %c0_i32_1 = arith.constant 0 : i32
    return %c0_i32, %c0_i32_0 : i32, i32
  }
  func.func @transform_5(%arg0: i32) -> (i32, i32) {
    %c0_i32 = arith.constant 0 : i32
    %c0_i32_0 = arith.constant 0 : i32
    %c0_i32_1 = arith.constant 0 : i32
    return %c0_i32, %c0_i32_0 : i32, i32
  }
  func.func @transform_6(%arg0: i32) -> (i32, i32) {
    %c0_i32 = arith.constant 0 : i32
    %c0_i32_0 = arith.constant 0 : i32
    return %arg0, %c0_i32 : i32, i32
  }
}

module attributes {stable_mosaic.version = 11 : i64} {
  func.func @_pooler_heads_kernel(%arg0: i32, %arg1: memref<2x32xbf16, #tpu.memory_space<vmem>>, %arg2: memref<32x32xbf16, #tpu.memory_space<vmem>>, %arg3: memref<1x32xf32, #tpu.memory_space<vmem>>, %arg4: memref<32x23xbf16, #tpu.memory_space<vmem>>, %arg5: memref<1x23xf32, #tpu.memory_space<vmem>>, %arg6: memref<2x23xf32, #tpu.memory_space<vmem>>) attributes {dimension_semantics = [#tpu.dimension_semantics<arbitrary>], iteration_bounds = array<i64: 1>, scalar_prefetch = 0 : i64, scratch_operands = 0 : i64, tpu.core_type = #tpu.core_type<tc>, window_params = [{pipeline_mode = #tpu.pipeline_mode<synchronous>, transform_indices = @transform_0, window_bounds = array<i64: 2, 32>}, {pipeline_mode = #tpu.pipeline_mode<synchronous>, transform_indices = @transform_1, window_bounds = array<i64: 32, 32>}, {pipeline_mode = #tpu.pipeline_mode<synchronous>, transform_indices = @transform_2, window_bounds = array<i64: 1, 32>}, {pipeline_mode = #tpu.pipeline_mode<synchronous>, transform_indices = @transform_3, window_bounds = array<i64: 32, 23>}, {pipeline_mode = #tpu.pipeline_mode<synchronous>, transform_indices = @transform_4, window_bounds = array<i64: 1, 23>}, {pipeline_mode = #tpu.pipeline_mode<synchronous>, transform_indices = @transform_5, window_bounds = array<i64: 2, 23>}]} {
    %c0 = arith.constant 0 : index
    %c0_0 = arith.constant 0 : index
    %0 = vector.load %arg1[%c0, %c0_0] : memref<2x32xbf16, #tpu.memory_space<vmem>>, vector<2x32xbf16>
    %c0_1 = arith.constant 0 : index
    %c0_2 = arith.constant 0 : index
    %1 = vector.load %arg2[%c0_1, %c0_2] : memref<32x32xbf16, #tpu.memory_space<vmem>>, vector<32x32xbf16>
    %cst = arith.constant dense<0.000000e+00> : vector<2x32xf32>
    %2 = tpu.matmul %0, %1, %cst {dimension_numbers = #tpu.dot_dimension_numbers<[1], [0], [0], [1], [0, 0, 1, 1], [], []>} : vector<2x32xbf16>, vector<32x32xbf16>, vector<2x32xf32> -> vector<2x32xf32>
    %c0_3 = arith.constant 0 : index
    %c0_4 = arith.constant 0 : index
    %3 = vector.load %arg3[%c0_3, %c0_4] : memref<1x32xf32, #tpu.memory_space<vmem>>, vector<1x32xf32>
    %4 = vector.broadcast %3 : vector<1x32xf32> to vector<2x32xf32>
    %5 = arith.addf %2, %4 : vector<2x32xf32>
    %6 = math.tanh %5 : vector<2x32xf32>
    %7 = arith.truncf %6 : vector<2x32xf32> to vector<2x32xbf16>
    %c0_5 = arith.constant 0 : index
    %c0_6 = arith.constant 0 : index
    %8 = vector.load %arg4[%c0_5, %c0_6] : memref<32x23xbf16, #tpu.memory_space<vmem>>, vector<32x23xbf16>
    %cst_7 = arith.constant dense<0.000000e+00> : vector<2x23xf32>
    %9 = tpu.matmul %7, %8, %cst_7 {dimension_numbers = #tpu.dot_dimension_numbers<[1], [0], [0], [1], [0, 0, 1, 1], [], []>} : vector<2x32xbf16>, vector<32x23xbf16>, vector<2x23xf32> -> vector<2x23xf32>
    %c0_8 = arith.constant 0 : index
    %c0_9 = arith.constant 0 : index
    %10 = vector.load %arg5[%c0_8, %c0_9] : memref<1x23xf32, #tpu.memory_space<vmem>>, vector<1x23xf32>
    %11 = vector.broadcast %10 : vector<1x23xf32> to vector<2x23xf32>
    %12 = arith.addf %9, %11 : vector<2x23xf32>
    %c0_10 = arith.constant 0 : index
    %c0_11 = arith.constant 0 : index
    %13 = vector.load %arg6[%c0_10, %c0_11] : memref<2x23xf32, #tpu.memory_space<vmem>>, vector<2x23xf32>
    tpu.vector_store %arg6[%c0_10, %c0_11], %12 {strides = array<i32>} : memref<2x23xf32, #tpu.memory_space<vmem>>, vector<2x23xf32>,
    return
  }
  func.func @transform_0(%arg0: i32) -> (i32, i32) {
    %c0_i32 = arith.constant 0 : i32
    %c0_i32_0 = arith.constant 0 : i32
    %c0_i32_1 = arith.constant 0 : i32
    return %c0_i32, %c0_i32_0 : i32, i32
  }
  func.func @transform_1(%arg0: i32) -> (i32, i32) {
    %c0_i32 = arith.constant 0 : i32
    %c0_i32_0 = arith.constant 0 : i32
    %c0_i32_1 = arith.constant 0 : i32
    return %c0_i32, %c0_i32_0 : i32, i32
  }
  func.func @transform_2(%arg0: i32) -> (i32, i32) {
    %c0_i32 = arith.constant 0 : i32
    %c0_i32_0 = arith.constant 0 : i32
    %c0_i32_1 = arith.constant 0 : i32
    return %c0_i32, %c0_i32_0 : i32, i32
  }
  func.func @transform_3(%arg0: i32) -> (i32, i32) {
    %c0_i32 = arith.constant 0 : i32
    %c0_i32_0 = arith.constant 0 : i32
    %c0_i32_1 = arith.constant 0 : i32
    return %c0_i32, %c0_i32_0 : i32, i32
  }
  func.func @transform_4(%arg0: i32) -> (i32, i32) {
    %c0_i32 = arith.constant 0 : i32
    %c0_i32_0 = arith.constant 0 : i32
    %c0_i32_1 = arith.constant 0 : i32
    return %c0_i32, %c0_i32_0 : i32, i32
  }
  func.func @transform_5(%arg0: i32) -> (i32, i32) {
    %c0_i32 = arith.constant 0 : i32
    %c0_i32_0 = arith.constant 0 : i32
    %c0_i32_1 = arith.constant 0 : i32
    return %c0_i32, %c0_i32_0 : i32, i32
  }
}

</mosaic_0001>

<bundles_post_ra>
// kernel: kobert_extended_forward.12
= control target key start
LH: loop header
LB: loop body
LE: loop exit
PB: predicated region body
PF: predicated region fallthrough
CT: control target
= control target key end

     0   :  { %vm16_vm0 = vcmask 261120   ;;  %vm70_vm1 = vcmask 257024   ;;  %s129_s0 = inlined_call_operand.vmem [shape: f32[16,32], index: 0, kind: input, shape index: {}]   ;;  %s130_s1 = inlined_call_operand.vmem [shape: f32[1,32], index: 1, kind: input, shape index: {}]   ;;  %s131_s2 = inlined_call_operand.vmem [shape: f32[1,32], index: 2, kind: input, shape index: {}]   ;;  %s132_s3 = inlined_call_operand.vmem [shape: bf16[16,32], index: 3, kind: output, shape index: {}]  }
   0x1   :  { %v14_v0 = vld [vmem:[%s129_s0] sm:$0xff]  ;;  %v15_v1 = vld [vmem:[%s129_s0 + $0x8] sm:$0xff] }
   0x2   :  { %v17_v2 = vsel %vm16_vm0, %v14_v0, 0.0  ;;  %v20_v3 = vsel %vm16_vm0, %v15_v1, 0.0  ;;  %v77_v21 = vld [vmem:[%s130_s1] ss:$0 sm:$0xff] }
   0x3   :  { %18 = vadd.xlane.f32.xlu0 %v17_v2  ;;  %v78_v23 = vld [vmem:[%s131_s2] ss:$0 sm:$0xff] }
   0x7   :  { %21 = vadd.xlane.f32.xlu0 %v20_v3 }
  0x90   :  { %v19_v4 = vpop.xlane.xlu0 %18 }
  0x91   :  { %v24_v5 = vmul.f32 0.03125, %v19_v4 }
  0x93   :  { %v26_v6 = vsub.f32 %v14_v0, %v24_v5 }
  0x94   :  { %v22_v7 = vpop.xlane.xlu0 %21 }
  0x95   :  { %v25_v8 = vmul.f32 0.03125, %v22_v7  ;;  %v28_v9 = vmul.f32 %v26_v6, %v26_v6 }
  0x97   :  { %v27_v10 = vsub.f32 %v15_v1, %v25_v8  ;;  %v30_v11 = vsel %vm16_vm0, %v28_v9, 0.0 }
  0x98   :  { %31 = vadd.xlane.f32.xlu1 %v30_v11 }
  0x99   :  { %v29_v12 = vmul.f32 %v27_v10, %v27_v10 }
  0x9b   :  { %v33_v13 = vsel %vm16_vm0, %v29_v12, 0.0 }
  0x9c   :  { %34 = vadd.xlane.f32.xlu1 %v33_v13 }
 0x125   :  { %v32_v14 = vpop.xlane.xlu1 %31 }
 0x126   :  { %v36_v15 = vmul.f32 0.03125, %v32_v14 }
 0x128   :  { %v38_v16 = vadd.f32 1e-12, %v36_v15 }
 0x129   :  { %v35_v17 = vpop.xlane.xlu1 %34 }
 0x12a   :  { %83 = vrsqrt.f32 %v38_v16  ;;  %v37_v18 = vmul.f32 0.03125, %v35_v17 }
 0x12c   :  { %v39_v19 = vadd.f32 1e-12, %v37_v18 }
 0x12e   :  { %85 = vrsqrt.f32 %v39_v19 }
 0x134   :  { %v84_v20 = vpop.eup %83 }
 0x135   :  { %v42_v22 = vmul.f32 %v84_v20, %v26_v6 }
 0x137   :  { %v51_v24 = vmul.f32 %v77_v21, %v42_v22 }
 0x138   :  { %v86_v25 = vpop.eup %85 }
 0x139   :  { %v60_v26 = vadd.f32 %v78_v23, %v51_v24  ;;  %v43_v27 = vmul.f32 %v86_v25, %v27_v10 }
 0x13b   :  { %v81_v28 = vpack.c.bf16 %v60_v26, %v60_v26  ;;  %v52_v29 = vmul.f32 %v77_v21, %v43_v27 }
 0x13d   :  { %71 = vst.msk [vmem:[%s132_s3] sm:$0xf] %vm70_vm1, %v81_v28  ;;  %v61_v30 = vadd.f32 %v78_v23, %v52_v29 }
 0x13f   :  { %v82_v31 = vpack.c.bf16 %v61_v30, %v61_v30 }
 0x141   :  { %72 = vst.msk [vmem:[%s132_s3 + $0x4] sm:$0xf] %vm70_vm1, %v82_v31 }

// kernel: kobert_extended_forward.15
= control target key start
LH: loop header
LB: loop body
LE: loop exit
PB: predicated region body
PF: predicated region fallthrough
CT: control target
= control target key end

     0   :  { %v200_v0 = vmov 0.0   ;;  %vm201_vm0 = vmmov 0   ;;  %vm54_vm1 = vcmask 261120   ;;  %vm158_vm2 = vcmask 257024   ;;  %s269_s1 = inlined_call_operand.vmem [shape: bf16[32,32], index: 1, kind: input, shape index: {}]   ;;  %s270_s0 = inlined_call_operand.vmem [shape: bf16[16,32], index: 0, kind: input, shape index: {}]   ;;  %s271_s3 = inlined_call_operand.vmem [shape: bf16[16,32], index: 3, kind: input, shape index: {}]   ;;  %s272_s2 = inlined_call_operand.vmem [shape: f32[1,32], index: 2, kind: input, shape index: {}]   ;;  %s273_s4 = inlined_call_operand.vmem [shape: f32[1,32], index: 4, kind: input, shape index: {}]   ;;  %s274_s5 = inlined_call_operand.vmem [shape: f32[1,32], index: 5, kind: input, shape index: {}]   ;;  %s275_s6 = inlined_call_operand.vmem [shape: bf16[16,32], index: 6, kind: output, shape index: {}]  }
   0x1   :  { %183 = vmatprep.subr.bf16.mxu0 %v200_v0  ;;  %v193_v1 = vld [vmem:[%s269_s1] sm:$0xff]   ;;  %187 = vmatprep.mubr.msk.bf16.mxu0 %vm201_vm0, %v200_v0  ;;  %v194_v2 = vld [vmem:[%s269_s1 + $0x8] sm:$0xff]  }
   0x2   :  { %184 = vmatpush3.bf16.msra.mxu0 %v193_v1  ;;  %v195_v3 = vld [vmem:[%s270_s0] sm:$0xff]  }
   0x3   :  { %185 = vmatprep.subr.bf16.mxu0 %v200_v0  ;;  %v177_v4 = vld [vmem:[%s271_s3] sm:$0xff]  }
   0x4   :  { %v165_v5 = vld [vmem:[%s272_s2] ss:$0 sm:$0xff]  ;;  %v178_v6 = vunpack.c.l.bf16 %v177_v4  ;;  %v179_v10 = vunpack.c.h.bf16 %v177_v4 }
   0x5   :  { %v170_v35 = vld [vmem:[%s273_s4] ss:$0 sm:$0xff] }
   0x6   :  { %186 = vmatpush3.bf16.msra.mxu0 %v194_v2  ;;  %v171_v37 = vld [vmem:[%s274_s5] ss:$0 sm:$0xff] }
   0x9   :  { %188 = vmatmul.mubr.msk.bf16.vlgmr.msra.gmra.mrb[0].mxu0 %vm54_vm1, %v195_v3 }
  0xdc   :  { %v92_v7 = vpop.f32.mrb[0].mxu0 }
  0xdd   :  { %v93_v8 = vadd.f32 %v165_v5, %v92_v7  ;;  %v189_v9 = vpop.f32.mrb[1].mxu0 }
  0xde   :  { %v95_v11 = vpop.f32.mrb[2].mxu0 }
  0xdf   :  { %v96_v12 = vadd.f32 %v165_v5, %v95_v11  ;;  %v190_v13 = vpop.f32.mrb[3].mxu0  ;;  %v103_v14 = vadd.f32 %v178_v6, %v93_v8 }
  0xe1   :  { %v105_v15 = vsel %vm54_vm1, %v103_v14, 0.0  ;;  %v104_v16 = vadd.f32 %v179_v10, %v96_v12 }
  0xe2   :  { %106 = vadd.xlane.f32.xlu0 %v105_v15 }
  0xe3   :  { %v108_v17 = vsel %vm54_vm1, %v104_v16, 0.0 }
  0xe6   :  { %109 = vadd.xlane.f32.xlu0 %v108_v17 }
 0x16f   :  { %v107_v18 = vpop.xlane.xlu0 %106 }
 0x170   :  { %v112_v19 = vmul.f32 0.03125, %v107_v18 }
 0x172   :  { %v114_v20 = vsub.f32 %v103_v14, %v112_v19 }
 0x173   :  { %v110_v21 = vpop.xlane.xlu0 %109 }
 0x174   :  { %v113_v22 = vmul.f32 0.03125, %v110_v21  ;;  %v116_v23 = vmul.f32 %v114_v20, %v114_v20 }
 0x176   :  { %v115_v24 = vsub.f32 %v104_v16, %v113_v22  ;;  %v118_v25 = vsel %vm54_vm1, %v116_v23, 0.0 }
 0x177   :  { %119 = vadd.xlane.f32.xlu1 %v118_v25 }
 0x178   :  { %v117_v26 = vmul.f32 %v115_v24, %v115_v24 }
 0x17a   :  { %v121_v27 = vsel %vm54_vm1, %v117_v26, 0.0 }
 0x17b   :  { %122 = vadd.xlane.f32.xlu1 %v121_v27 }
 0x204   :  { %v120_v28 = vpop.xlane.xlu1 %119 }
 0x205   :  { %v124_v29 = vmul.f32 0.03125, %v120_v28 }
 0x207   :  { %v126_v30 = vadd.f32 1e-12, %v124_v29 }
 0x208   :  { %v123_v31 = vpop.xlane.xlu1 %122 }
 0x209   :  { %196 = vrsqrt.f32 %v126_v30  ;;  %v125_v32 = vmul.f32 0.03125, %v123_v31 }
 0x20b   :  { %v127_v33 = vadd.f32 1e-12, %v125_v32 }
 0x20d   :  { %198 = vrsqrt.f32 %v127_v33 }
 0x213   :  { %v197_v34 = vpop.eup %196 }
 0x214   :  { %v130_v36 = vmul.f32 %v197_v34, %v114_v20 }
 0x216   :  { %v139_v38 = vmul.f32 %v170_v35, %v130_v36 }
 0x217   :  { %v199_v39 = vpop.eup %198 }
 0x218   :  { %v148_v40 = vadd.f32 %v171_v37, %v139_v38  ;;  %v131_v41 = vmul.f32 %v199_v39, %v115_v24 }
 0x21a   :  { %v174_v42 = vpack.c.bf16 %v148_v40, %v148_v40  ;;  %v140_v43 = vmul.f32 %v170_v35, %v131_v41 }
 0x21c   :  { %159 = vst.msk [vmem:[%s275_s6] sm:$0xf] %vm158_vm2, %v174_v42  ;;  %v149_v44 = vadd.f32 %v171_v37, %v140_v43 }
 0x21e   :  { %v175_v45 = vpack.c.bf16 %v149_v44, %v149_v44 }
 0x220   :  { %160 = vst.msk [vmem:[%s275_s6 + $0x4] sm:$0xf] %vm158_vm2, %v175_v45 }

// kernel: kobert_extended_forward.13
= control target key start
LH: loop header
LB: loop body
LE: loop exit
PB: predicated region body
PF: predicated region fallthrough
CT: control target
= control target key end

     0   :  { %v130_v0 = vmov 0.0   ;;  %vm131_vm0 = vmmov 0   ;;  %vm45_vm1 = vcmask 261120   ;;  %vm98_vm2 = vcmask 781312   ;;  %s170_s1 = inlined_call_operand.vmem [shape: bf16[32,96], index: 1, kind: input, shape index: {}]   ;;  %s171_s0 = inlined_call_operand.vmem [shape: bf16[16,32], index: 0, kind: input, shape index: {}]   ;;  %s172_s2 = inlined_call_operand.vmem [shape: f32[1,96], index: 2, kind: input, shape index: {}]   ;;  %s173_s3 = inlined_call_operand.vmem [shape: bf16[16,96], index: 3, kind: output, shape index: {}]  }
   0x1   :  { %117 = vmatprep.subr.bf16.mxu0 %v130_v0  ;;  %v127_v1 = vld [vmem:[%s170_s1] sm:$0xff]   ;;  %121 = vmatprep.mubr.msk.bf16.mxu0 %vm131_vm0, %v130_v0  ;;  %v128_v2 = vld [vmem:[%s170_s1 + $0x8] sm:$0xff]  }
   0x2   :  { %118 = vmatpush3.bf16.msra.mxu0 %v127_v1  ;;  %v129_v3 = vld [vmem:[%s171_s0] sm:$0xff]  }
   0x3   :  { %119 = vmatprep.subr.bf16.mxu0 %v130_v0  ;;  %v105_v4 = vld [vmem:[%s172_s2] ss:$0 sm:$0xff] }
   0x6   :  { %120 = vmatpush3.bf16.msra.mxu0 %v128_v2 }
   0x9   :  { %122 = vmatmul.mubr.msk.bf16.vlgmr.msra.gmra.mrb[0].mxu0 %vm45_vm1, %v129_v3 }
  0xdc   :  { %v83_v5 = vpop.f32.mrb[0].mxu0 }
  0xdd   :  { %v84_v6 = vadd.f32 %v105_v4, %v83_v5  ;;  %v123_v7 = vpop.f32.mrb[1].mxu0 }
  0xde   :  { %v86_v8 = vpop.f32.mrb[2].mxu0 }
  0xdf   :  { %v112_v9 = vpack.c.bf16 %v84_v6, %v84_v6  ;;  %v87_v10 = vadd.f32 %v105_v4, %v86_v8  ;;  %v124_v11 = vpop.f32.mrb[3].mxu0 }
  0xe1   :  { %99 = vst.msk [vmem:[%s173_s3] sm:$0xf] %vm98_vm2, %v112_v9  ;;  %v113_v12 = vpack.c.bf16 %v87_v10, %v87_v10 }
  0xe3   :  { %100 = vst.msk [vmem:[%s173_s3 + $0x4] sm:$0xf] %vm98_vm2, %v113_v12 }

// kernel: kobert_extended_forward.14
= control target key start
LH: loop header
LB: loop body
LE: loop exit
PB: predicated region body
PF: predicated region fallthrough
CT: control target
= control target key end

     0   :  { %s778_s15 = smov 0   ;;  %s780_s16 = smov 0   ;;  %s853_s0 = inlined_call_operand.vmem [shape: bf16[2,8,32], index: 0, kind: input, shape index: {}]   ;;  %s854_s1 = inlined_call_operand.vmem [shape: bf16[2,8,32], index: 1, kind: input, shape index: {}]   ;;  %s855_s2 = inlined_call_operand.vmem [shape: bf16[2,8,32], index: 2, kind: input, shape index: {}]   ;;  %s856_s3 = inlined_call_operand.vmem [shape: f32[2,1,8], index: 3, kind: input, shape index: {}]   ;;  %s857_s4 = inlined_call_operand.vmem [shape: bf16[2,8,32], index: 4, kind: output, shape index: {}]  }
   0x1   :  { %s782_s17 = smov 0  }
   0x2 LB: > { %s26_s18 = sadd.s32 1, %s743_s16  ;;  %p639_p0 = scmp.ge.s32.totalorder %s747_s17, 1  ;;  %s747_s17 = sphi %s782_s17, %s14_s17   ;;  %s743_s16 = sphi %s780_s16, %s859_s16   ;;  %s739_s15 = sphi %s778_s15, %s858_s15  }
   0x3   : > { %p28_p1 = scmp.ge.s32.totalorder %s26_s18, 2  ;;  %p206_p2 = scmp.lt.s32.totalorder %s747_s17, 3 }
   0x5   : > { %s861_s18 = smov (%p28_p1, %s26_s18), 0  ;;  %p207_p3 = pnand %p639_p0, %p206_p2 }
   0x6   : > { %p247_p4 = scmp.lt.s32.totalorder (!%p207_p3), %s739_s15, 1  ;;  %v749_v0 = vmov (!%p207_p3), 0.0   ;;  %vm750_vm0 = vmmov (!%p207_p3), 0   ;;  %vm286_vm1 = vcmask (!%p207_p3), 130048   ;;  %vm333_vm2 = vcmask (!%p207_p3), 64512   ;;  %s751_s29 = smov (!%p207_p3), 112  }
   0x7   : > { %210 = sbr.rel (%p207_p3) target bundleno = 1424 (0x590), region = 36  ;;  %663 = vmatprep.subr.bf16.mxu0 (!%p207_p3), %v749_v0  ;;  %665 = vmatprep.mubr.msk.bf16.mxu0 (!%p207_p3), %vm750_vm0, %v749_v0  ;;  %vm349_vm3 = vcmask (!%p207_p3), 1043456   ;;  %vm394_vm4 = vcmask (!%p207_p3), 125952   ;;  %s752_s10 = smov (!%p207_p3), 16   ;;  %vm526_vm5 = vcmask (!%p207_p3), 257152  }
   0x8   : > { %669 = vmatprep.subr.bf16.mxu1 (!%p207_p3), %v749_v0  ;;  %671 = vmatprep.mubr.msk.bf16.mxu1 (!%p207_p3), %vm750_vm0, %v749_v0 }
   0xe   : > { %s863_s15 = smov (!%p247_p4, %s739_s15), 1 }
   0xf   : > { %s798_s19 = sshll.u32 %s863_s15, 2  ;;  %s264_s28 = scalar_lea.vmem %s856_s3, %s863_s15 }
  0x10   : > { %s257_s22 = scalar_lea.vmem %s854_s1, %s798_s19  ;;  %s253_s25 = scalar_lea.vmem %s853_s0, %s798_s19  ;;  %v644_v7 = vld [vmem:[%s264_s28] ss:$0 sm:$0xff] }
  0x11   : > { %v278_v1 = vld [vmem:[%s257_s22] sm:$0xf]  ;;  %s822_s6 = scalar_lea.vmem %s855_s2, %s798_s19  ;;  %s834_s9 = scalar_lea.vmem %s857_s4, %s798_s19 }
  0x12   : > { %v274_v2 = vld [vmem:[%s253_s25] sm:$0xf]  ;;  %v291_v3 = vsel %vm286_vm1, %v278_v1, 0 }
  0x13   : > { %v275_v4 = vunpack.c.l.bf16 %v274_v2  ;;  %664 = vmatpush3.bf16.xpose.msra.mxu0 %v291_v3  ;;  %v715_v14 = vld [vmem:[%s257_s22] ss:$0 sps:$4 sm:$0xff]  }
  0x14   : > { %681 = vmatprep.subr.bf16.mxu0 %v749_v0  ;;  %v396_v15 = vld [vmem:[%s253_s25] sm:$0xf]  ;;  %408 = vrot.lane.b32.xlu1 %v715_v14, %s751_s29 }
  0x15   : > { %v276_v5 = vmul.f32 0.25, %v275_v4  ;;  %v397_v16 = vunpack.c.l.bf16 %v396_v15  ;;  %v279_v24 = vld [vmem:[%s822_s6] sm:$0xf] }
  0x16   : > { %v351_v25 = vsel %vm349_vm3, %v279_v24, 0  ;;  %v716_v44 = vld [vmem:[%s822_s6] ss:$0 sps:$4 sm:$0xff]  }
  0x17   : > { %v277_v6 = vpack.c.bf16 %v276_v5, %v276_v5  ;;  %v398_v17 = vmul.f32 0.25, %v397_v16  ;;  %670 = vmatpush3.bf16.msra.mxu1 %v351_v25 }
  0x18   : > { %675 = vmatprep.subr.bf16.mxu1 %v749_v0 }
  0x19   : > { %v399_v18 = vpack.c.bf16 %v398_v17, %v398_v17 }
  0x1a   : > { %666 = vmatmul.mubr.msk.bf16.vlgmr.msra.gmra.mrb[0].mxu0 %vm286_vm1, %v277_v6 }
  0x1b   : > { %683 = vmatprep.mubr.msk.bf16.mxu0 %vm750_vm0, %v749_v0  ;;  %403 = vrot.lane.b32.xlu1 %v399_v18, %s751_s29 }
  0x86   : > { %v409_v28 = vpop.permute.xlu1 %408 }
  0x87   : > { %v414_v30 = vsel %vm286_vm1, %v409_v28, 0 }
  0x8d   : > { %v404_v32 = vpop.permute.xlu1 %403 }
  0xed   : > { %v327_v8 = vpop.f32.mrb[0].mxu0 }
  0xee   : > { %v328_v9 = vadd.f32 %v644_v7, %v327_v8  ;;  %v667_v10 = vpop.f32.mrb[1].mxu0 }
  0xef   : > { %v330_v11 = vpop.f32.mrb[2].mxu0 }
  0xf0   : > { %v668_v12 = vpop.f32.mrb[3].mxu0  ;;  %v334_v13 = vsel %vm333_vm2, %v328_v9, -inf }
  0xf1   : > { %335 = vmax.xlane.f32.xlu0 %v334_v13 }
 0x17e   : > { %v336_v19 = vpop.xlane.xlu0 %335 }
 0x17f   : > { %v337_v20 = vsub.f32 %v328_v9, %v336_v19 }
 0x181   : > { %v338_v21 = vmul.f32 1.442695, %v337_v20 }
 0x183   : > { %717 = vpow2.f32 %v338_v21 }
 0x18d   : > { %v718_v22 = vpop.eup %717 }
 0x18e   : > { %v340_v23 = vsel %vm333_vm2, %v718_v22, 0.0 }
 0x18f   : > { %341 = vadd.xlane.f32.xlu0 %v340_v23 }
 0x21c   : > { %v342_v26 = vpop.xlane.xlu0 %341 }
 0x21d   : > { %719 = vrcp.f32 %v342_v26 }
 0x227   : > { %v720_v27 = vpop.eup %719 }
 0x228   : > { %v344_v29 = vmul.f32 %v720_v27, %v718_v22 }
 0x22a   : > { %v345_v31 = vpack.c.bf16 %v344_v29, %v344_v29 }
 0x22c   : > { %672 = vmatmul.mubr.msk.bf16.vlgmr.msra.gmra.mrb[0].mxu1 %vm333_vm2, %v345_v31 }
 0x22d   : > { %676 = vmatpush3.bf16.xpose.msra.mxu1 %v414_v30  ;;  %677 = vmatprep.mubr.msk.bf16.mxu1 %vm750_vm0, %v749_v0 }
 0x234   : > { %678 = vmatmul.mubr.msk.bf16.vlgmr.msra.gmra.mrb[4].mxu1 %vm286_vm1, %v404_v32 }
 0x2ff   : > { %v387_v33 = vpop.f32.mrb[0].mxu1 }
 0x300   : > { %v393_v34 = vpack.c.bf16 %v387_v33, %v387_v33  ;;  %v673_v35 = vpop.f32.mrb[1].mxu1 }
 0x301   : > { %v390_v36 = vpop.f32.mrb[2].mxu1 }
 0x302   : > { %395 = vst.msk [vmem:[%s834_s9] sm:$0xf] %vm394_vm4, %v393_v34  ;;  %v674_v37 = vpop.f32.mrb[3].mxu1 }
 0x307   : > { %v450_v38 = vpop.f32.mrb[4].mxu1 }
 0x308   : > { %v451_v39 = vadd.f32 %v644_v7, %v450_v38  ;;  %v679_v40 = vpop.f32.mrb[5].mxu1 }
 0x309   : > { %v453_v41 = vpop.f32.mrb[6].mxu1 }
 0x30a   : > { %v680_v42 = vpop.f32.mrb[7].mxu1  ;;  %v456_v43 = vsel %vm333_vm2, %v451_v39, -inf }
 0x30b   : > { %457 = vmax.xlane.f32.xlu0 %v456_v43 }
 0x321   : > { %471 = vrot.lane.b32.xlu0 %v716_v44, %s751_s29 }
 0x398   : > { %v458_v45 = vpop.xlane.xlu0 %457 }
 0x399   : > { %v459_v46 = vsub.f32 %v451_v39, %v458_v45 }
 0x39b   : > { %v460_v47 = vmul.f32 1.442695, %v459_v46 }
 0x39c   : > { %v472_v50 = vpop.permute.xlu0 %471 }
 0x39d   : > { %721 = vpow2.f32 %v460_v47  ;;  %v477_v51 = vsel %vm349_vm3, %v472_v50, 0 }
 0x39e   : > { %682 = vmatpush3.bf16.msra.mxu0 %v477_v51 }
 0x3a7   : > { %v722_v48 = vpop.eup %721 }
 0x3a8   : > { %v462_v49 = vsel %vm333_vm2, %v722_v48, 0.0 }
 0x3a9   : > { %463 = vadd.xlane.f32.xlu1 %v462_v49 }
 0x436   : > { %v464_v52 = vpop.xlane.xlu1 %463 }
 0x437   : > { %723 = vrcp.f32 %v464_v52 }
 0x441   : > { %v724_v53 = vpop.eup %723 }
 0x442   : > { %v466_v54 = vmul.f32 %v724_v53, %v722_v48 }
 0x444   : > { %v467_v55 = vpack.c.bf16 %v466_v54, %v466_v54 }
 0x446   : > { %684 = vmatmul.mubr.msk.bf16.vlgmr.msra.gmra.mrb[4].mxu0 %vm333_vm2, %v467_v55 }
 0x519   : > { %v513_v56 = vpop.f32.mrb[4].mxu0 }
 0x51a   : > { %v654_v57 = vpack.c.bf16 %v513_v56, %v513_v56  ;;  %v685_v58 = vpop.f32.mrb[5].mxu0 }
 0x51b   : > { %v516_v59 = vpop.f32.mrb[6].mxu0 }
 0x51c   : > { %523 = vrot.lane.b32.xlu0 %v654_v57, %s752_s10  ;;  %v686_v60 = vpop.f32.mrb[7].mxu0 }
 0x58e   : > { %v524_v61 = vpop.permute.xlu0 %523 }
 0x58f   : > { %527 = vst.msk [vmem:[%s834_s9] sm:$0xf] %vm526_vm5, %v524_v61 }
 0x590 PF: > { %s14_s17 = sadd.s32 1, %s747_s17   ;;  %s858_s15 = smov %s743_s16 }
 0x591   : > { %p11_p5 = scmp.ge.s32.totalorder %s14_s17, 4   ;;  %s859_s16 = smov %s861_s18 }
 0x593   :  { %13 = sbr.rel (!%p11_p5) target bundleno = 2 (0x2), region = 75 }

// kernel: kobert_extended_forward.16
= control target key start
LH: loop header
LB: loop body
LE: loop exit
PB: predicated region body
PF: predicated region fallthrough
CT: control target
= control target key end

     0   :  { %v152_v0 = vmov 0.0   ;;  %vm153_vm0 = vmmov 0   ;;  %vm45_vm1 = vcmask 261120   ;;  %vm116_vm2 = vcmask 519168   ;;  %s192_s1 = inlined_call_operand.vmem [shape: bf16[32,64], index: 1, kind: input, shape index: {}]   ;;  %s193_s0 = inlined_call_operand.vmem [shape: bf16[16,32], index: 0, kind: input, shape index: {}]   ;;  %s194_s2 = inlined_call_operand.vmem [shape: f32[1,64], index: 2, kind: input, shape index: {}]   ;;  %s195_s3 = inlined_call_operand.vmem [shape: bf16[16,64], index: 3, kind: output, shape index: {}]  }
   0x1   :  { %135 = vmatprep.subr.bf16.mxu0 %v152_v0  ;;  %v145_v1 = vld [vmem:[%s192_s1] sm:$0xff]   ;;  %139 = vmatprep.mubr.msk.bf16.mxu0 %vm153_vm0, %v152_v0  ;;  %v146_v2 = vld [vmem:[%s192_s1 + $0x8] sm:$0xff]  }
   0x2   :  { %136 = vmatpush3.bf16.msra.mxu0 %v145_v1  ;;  %v147_v3 = vld [vmem:[%s193_s0] sm:$0xff]  }
   0x3   :  { %137 = vmatprep.subr.bf16.mxu0 %v152_v0  ;;  %v123_v4 = vld [vmem:[%s194_s2] ss:$0 sm:$0xff] }
   0x6   :  { %138 = vmatpush3.bf16.msra.mxu0 %v146_v2 }
   0x9   :  { %140 = vmatmul.mubr.msk.bf16.vlgmr.msra.gmra.mrb[0].mxu0 %vm45_vm1, %v147_v3 }
  0xdc   :  { %v83_v5 = vpop.f32.mrb[0].mxu0 }
  0xdd   :  { %v84_v6 = vadd.f32 %v123_v4, %v83_v5  ;;  %v141_v7 = vpop.f32.mrb[1].mxu0 }
  0xde   :  { %v86_v8 = vpop.f32.mrb[2].mxu0 }
  0xdf   :  { %v90_v9 = vmul.f32 %v84_v6, %v84_v6  ;;  %v87_v10 = vadd.f32 %v123_v4, %v86_v8  ;;  %v142_v11 = vpop.f32.mrb[3].mxu0 }
  0xe1   :  { %v92_v12 = vmul.f32 %v90_v9, %v84_v6  ;;  %v91_v13 = vmul.f32 %v87_v10, %v87_v10 }
  0xe3   :  { %v94_v14 = vmul.f32 0.044715, %v92_v12  ;;  %v93_v15 = vmul.f32 %v91_v13, %v87_v10 }
  0xe5   :  { %v96_v16 = vadd.f32 %v94_v14, %v84_v6  ;;  %v95_v17 = vmul.f32 0.044715, %v93_v15 }
  0xe7   :  { %v98_v18 = vmul.f32 0.7978846, %v96_v16  ;;  %v97_v19 = vadd.f32 %v95_v17, %v87_v10 }
  0xe9   :  { %148 = vtanh.f32 %v98_v18  ;;  %v99_v20 = vmul.f32 0.7978846, %v97_v19 }
  0xeb   :  { %150 = vtanh.f32 %v99_v20 }
  0xf3   :  { %v149_v21 = vpop.eup %148 }
  0xf4   :  { %v102_v22 = vadd.f32 1.0, %v149_v21 }
  0xf5   :  { %v151_v23 = vpop.eup %150 }
  0xf6   :  { %v104_v24 = vmul.f32 0.5, %v102_v22  ;;  %v103_v25 = vadd.f32 1.0, %v151_v23 }
  0xf8   :  { %v106_v26 = vmul.f32 %v104_v24, %v84_v6  ;;  %v105_v27 = vmul.f32 0.5, %v103_v25 }
  0xfa   :  { %v130_v28 = vpack.c.bf16 %v106_v26, %v106_v26  ;;  %v107_v29 = vmul.f32 %v105_v27, %v87_v10 }
  0xfc   :  { %117 = vst.msk [vmem:[%s195_s3] sm:$0xf] %vm116_vm2, %v130_v28  ;;  %v131_v30 = vpack.c.bf16 %v107_v29, %v107_v29 }
  0xfe   :  { %118 = vst.msk [vmem:[%s195_s3 + $0x4] sm:$0xf] %vm116_vm2, %v131_v30 }

// kernel: kobert_extended_forward.17
= control target key start
LH: loop header
LB: loop body
LE: loop exit
PB: predicated region body
PF: predicated region fallthrough
CT: control target
= control target key end

     0   :  { %v227_v0 = vmov 0.0   ;;  %vm228_vm0 = vmmov 0   ;;  %vm70_vm1 = vcmask 523264   ;;  %vm121_vm2 = vcmask 261120   ;;  %s301_s1 = inlined_call_operand.vmem [shape: bf16[64,32], index: 1, kind: input, shape index: {}]   ;;  %s302_s0 = inlined_call_operand.vmem [shape: bf16[16,64], index: 0, kind: input, shape index: {}]   ;;  %s303_s3 = inlined_call_operand.vmem [shape: bf16[16,32], index: 3, kind: input, shape index: {}]   ;;  %s304_s2 = inlined_call_operand.vmem [shape: f32[1,32], index: 2, kind: input, shape index: {}]   ;;  %s305_s4 = inlined_call_operand.vmem [shape: f32[1,32], index: 4, kind: input, shape index: {}]   ;;  %s306_s5 = inlined_call_operand.vmem [shape: f32[1,32], index: 5, kind: input, shape index: {}]   ;;  %s307_s6 = inlined_call_operand.vmem [shape: bf16[16,32], index: 6, kind: output, shape index: {}]  }
   0x1   :  { %204 = vmatprep.subr.bf16.mxu0 %v227_v0  ;;  %v218_v1 = vld [vmem:[%s301_s1] sm:$0xff]   ;;  %212 = vmatprep.mubr.msk.bf16.mxu0 %vm228_vm0, %v227_v0  ;;  %v219_v2 = vld [vmem:[%s301_s1 + $0x8] sm:$0xff]   ;;  %v220_v3 = vld [vmem:[%s301_s1 + $0x10] sm:$0xff]   ;;  %vm175_vm3 = vcmask 257024  }
   0x2   :  { %205 = vmatpush3.bf16.msra.mxu0 %v218_v1  ;;  %v221_v4 = vld [vmem:[%s301_s1 + $0x18] sm:$0xff]   ;;  %v222_v5 = vld [vmem:[%s302_s0] sm:$0xff]  }
   0x3   :  { %206 = vmatprep.subr.bf16.mxu0 %v227_v0  ;;  %v196_v6 = vld [vmem:[%s303_s3] sm:$0xff]  }
   0x4   :  { %v182_v7 = vld [vmem:[%s304_s2] ss:$0 sm:$0xff]  ;;  %v197_v8 = vunpack.c.l.bf16 %v196_v6  ;;  %v198_v12 = vunpack.c.h.bf16 %v196_v6 }
   0x5   :  { %v189_v37 = vld [vmem:[%s305_s4] ss:$0 sm:$0xff] }
   0x6   :  { %207 = vmatpush3.bf16.msra.mxu0 %v219_v2  ;;  %v190_v39 = vld [vmem:[%s306_s5] ss:$0 sm:$0xff] }
   0x7   :  { %208 = vmatprep.subr.bf16.mxu0 %v227_v0 }
   0xa   :  { %209 = vmatpush3.bf16.msra.mxu0 %v220_v3 }
   0xb   :  { %210 = vmatprep.subr.bf16.mxu0 %v227_v0 }
   0xe   :  { %211 = vmatpush3.bf16.msra.mxu0 %v221_v4 }
  0x11   :  { %213 = vmatmul.mubr.msk.bf16.vlgmr.msra.gmra.mrb[0].mxu0 %vm70_vm1, %v222_v5 }
  0xe4   :  { %v108_v9 = vpop.f32.mrb[0].mxu0 }
  0xe5   :  { %v109_v10 = vadd.f32 %v182_v7, %v108_v9  ;;  %v214_v11 = vpop.f32.mrb[1].mxu0 }
  0xe6   :  { %v111_v13 = vpop.f32.mrb[2].mxu0 }
  0xe7   :  { %v112_v14 = vadd.f32 %v182_v7, %v111_v13  ;;  %v215_v15 = vpop.f32.mrb[3].mxu0  ;;  %v119_v16 = vadd.f32 %v197_v8, %v109_v10 }
  0xe9   :  { %v122_v17 = vsel %vm121_vm2, %v119_v16, 0.0  ;;  %v120_v18 = vadd.f32 %v198_v12, %v112_v14 }
  0xea   :  { %123 = vadd.xlane.f32.xlu0 %v122_v17 }
  0xeb   :  { %v125_v19 = vsel %vm121_vm2, %v120_v18, 0.0 }
  0xee   :  { %126 = vadd.xlane.f32.xlu0 %v125_v19 }
 0x177   :  { %v124_v20 = vpop.xlane.xlu0 %123 }
 0x178   :  { %v129_v21 = vmul.f32 0.03125, %v124_v20 }
 0x17a   :  { %v131_v22 = vsub.f32 %v119_v16, %v129_v21 }
 0x17b   :  { %v127_v23 = vpop.xlane.xlu0 %126 }
 0x17c   :  { %v130_v24 = vmul.f32 0.03125, %v127_v23  ;;  %v133_v25 = vmul.f32 %v131_v22, %v131_v22 }
 0x17e   :  { %v132_v26 = vsub.f32 %v120_v18, %v130_v24  ;;  %v135_v27 = vsel %vm121_vm2, %v133_v25, 0.0 }
 0x17f   :  { %136 = vadd.xlane.f32.xlu1 %v135_v27 }
 0x180   :  { %v134_v28 = vmul.f32 %v132_v26, %v132_v26 }
 0x182   :  { %v138_v29 = vsel %vm121_vm2, %v134_v28, 0.0 }
 0x183   :  { %139 = vadd.xlane.f32.xlu1 %v138_v29 }
 0x20c   :  { %v137_v30 = vpop.xlane.xlu1 %136 }
 0x20d   :  { %v141_v31 = vmul.f32 0.03125, %v137_v30 }
 0x20f   :  { %v143_v32 = vadd.f32 1e-12, %v141_v31 }
 0x210   :  { %v140_v33 = vpop.xlane.xlu1 %139 }
 0x211   :  { %223 = vrsqrt.f32 %v143_v32  ;;  %v142_v34 = vmul.f32 0.03125, %v140_v33 }
 0x213   :  { %v144_v35 = vadd.f32 1e-12, %v142_v34 }
 0x215   :  { %225 = vrsqrt.f32 %v144_v35 }
 0x21b   :  { %v224_v36 = vpop.eup %223 }
 0x21c   :  { %v147_v38 = vmul.f32 %v224_v36, %v131_v22 }
 0x21e   :  { %v156_v40 = vmul.f32 %v189_v37, %v147_v38 }
 0x21f   :  { %v226_v41 = vpop.eup %225 }
 0x220   :  { %v165_v42 = vadd.f32 %v190_v39, %v156_v40  ;;  %v148_v43 = vmul.f32 %v226_v41, %v132_v26 }
 0x222   :  { %v193_v44 = vpack.c.bf16 %v165_v42, %v165_v42  ;;  %v157_v45 = vmul.f32 %v189_v37, %v148_v43 }
 0x224   :  { %176 = vst.msk [vmem:[%s307_s6] sm:$0xf] %vm175_vm3, %v193_v44  ;;  %v166_v46 = vadd.f32 %v190_v39, %v157_v45 }
 0x226   :  { %v194_v47 = vpack.c.bf16 %v166_v46, %v166_v46 }
 0x228   :  { %177 = vst.msk [vmem:[%s307_s6 + $0x4] sm:$0xf] %vm175_vm3, %v194_v47 }

// kernel: kobert_extended_forward.23
= control target key start
LH: loop header
LB: loop body
LE: loop exit
PB: predicated region body
PF: predicated region fallthrough
CT: control target
= control target key end

     0   :  { %v201_v0 = vmov 0.0   ;;  %vm202_vm0 = vmmov 0   ;;  %vm45_vm1 = vcmask 261120   ;;  %vm157_vm2 = vcmask 181248   ;;  %s259_s1 = inlined_call_operand.vmem [shape: bf16[32,32], index: 1, kind: input, shape index: {}]   ;;  %s260_s0 = inlined_call_operand.vmem [shape: bf16[2,32], index: 0, kind: input, shape index: {}]   ;;  %s261_s3 = inlined_call_operand.vmem [shape: bf16[32,23], index: 3, kind: input, shape index: {}]   ;;  %s262_s2 = inlined_call_operand.vmem [shape: f32[1,32], index: 2, kind: input, shape index: {}]   ;;  %s263_s4 = inlined_call_operand.vmem [shape: f32[1,23], index: 4, kind: input, shape index: {}]   ;;  %s264_s5 = inlined_call_operand.vmem [shape: f32[2,23], index: 5, kind: output, shape index: {}]  }
   0x1   :  { %177 = vmatprep.subr.bf16.mxu0 %v201_v0  ;;  %v195_v1 = vld [vmem:[%s259_s1] sm:$0xff]   ;;  %181 = vmatprep.mubr.msk.bf16.mxu0 %vm202_vm0, %v201_v0  ;;  %v196_v2 = vld [vmem:[%s259_s1 + $0x8] sm:$0xff]  }
   0x2   :  { %185 = vmatprep.subr.bf16.mxu1 %v201_v0  ;;  %189 = vmatprep.mubr.msk.bf16.mxu1 %vm202_vm0, %v201_v0  ;;  %v21_v3 = vld [vmem:[%s260_s0] sm:$0x1]  ;;  %v198_v5 = vld [vmem:[%s261_s3 + $0x8] sm:$0xff]  }
   0x3   :  { %178 = vmatpush3.bf16.msra.mxu0 %v195_v1  ;;  %v197_v4 = vld [vmem:[%s261_s3] sm:$0xff]  }
   0x4   :  { %179 = vmatprep.subr.bf16.mxu0 %v201_v0  ;;  %186 = vmatpush3.bf16.msra.mxu1 %v197_v4  ;;  %v163_v6 = vld [vmem:[%s262_s2] ss:$0 sm:$0xff] }
   0x5   :  { %187 = vmatprep.subr.bf16.mxu1 %v201_v0  ;;  %v167_v14 = vld [vmem:[%s263_s4] ss:$0 sm:$0xff] }
   0x7   :  { %180 = vmatpush3.bf16.msra.mxu0 %v196_v2 }
   0x8   :  { %188 = vmatpush3.bf16.msra.mxu1 %v198_v5 }
   0xa   :  { %182 = vmatmul.mubr.msk.bf16.vlgmr.msra.gmra.mrb[0].mxu0 %vm45_vm1, %v21_v3 }
  0xdd   :  { %v83_v7 = vpop.f32.mrb[0].mxu0 }
  0xde   :  { %v84_v8 = vadd.f32 %v163_v6, %v83_v7  ;;  %v183_v9 = vpop.f32.mrb[1].mxu0 }
  0xdf   :  { %v86_v10 = vpop.f32.mrb[2].mxu0 }
  0xe0   :  { %199 = vtanh.f32 %v84_v8  ;;  %v184_v11 = vpop.f32.mrb[3].mxu0 }
  0xea   :  { %v200_v12 = vpop.eup %199 }
  0xeb   :  { %v90_v13 = vpack.c.bf16 %v200_v12, %v200_v12 }
  0xed   :  { %190 = vmatmul.mubr.msk.bf16.vlgmr.msra.gmra.mrb[0].mxu1 %vm45_vm1, %v90_v13 }
 0x1c0   :  { %v151_v15 = vpop.f32.mrb[0].mxu1 }
 0x1c1   :  { %v152_v16 = vadd.f32 %v167_v14, %v151_v15  ;;  %v191_v17 = vpop.f32.mrb[1].mxu1 }
 0x1c2   :  { %v154_v18 = vpop.f32.mrb[2].mxu1 }
 0x1c3   :  { %158 = vst.msk [vmem:[%s264_s5] sm:$0x3] %vm157_vm2, %v152_v16  ;;  %v192_v19 = vpop.f32.mrb[3].mxu1 }

</bundles_post_ra>
